<compile_context>
chip_gen: v7x
topology: tpu7x:2x2x1
jax: 0.10.0
libtpu: 0.0.40
codegen_flags: <defaults>
</compile_context>

<pallas_src>
import functools

import jax
import jax.numpy as jnp
from jax.experimental import pallas as pl
from jax.experimental.pallas import tpu as pltpu


def _num_tensorcores():
    """Best-effort TensorCore count per device; safe fallback = 1."""
    try:
        info = pltpu.get_tpu_info()
        for name in ("num_cores", "core_count", "num_tensorcores", "tensorcore_count"):
            v = getattr(info, name, None)
            if isinstance(v, int) and v > 0:
                return v
    except Exception:
        pass
    try:
        v = getattr(jax.devices()[0], "num_cores", None)
        if isinstance(v, int) and v > 0:
            return v
    except Exception:
        pass
    return 1


def _refinement_kernel(x_ref, w_in_ref, b_in_ref, wd_ref, bd_ref,
                       w1_ref, b1_ref, w_out_ref, b_out_ref, out_ref,
                       halo_ref, *, dilations, max_d):
    """One grid step processes NB batch elements: (NB, T, dim) -> (NB, T, C_pad)."""
    NB, T, dim = x_ref.shape
    F = w_in_ref.shape[1]
    M = NB * T

    # Zero the halo regions once per grid step (center is overwritten each layer).
    # NOTE: must run every grid step (each core has its own scratch instance).
    halo_ref[:, pl.ds(0, max_d), :] = jnp.zeros((NB, max_d, F), halo_ref.dtype)
    halo_ref[:, pl.ds(max_d + T, max_d), :] = jnp.zeros((NB, max_d, F), halo_ref.dtype)

    # --- input 1x1 conv: (M, dim) @ (dim, F) + b  (bf16 operands, f32 accum) ---
    x2 = x_ref[...].reshape(M, dim)
    h = jnp.dot(x2, w_in_ref[...],
                preferred_element_type=jnp.float32) + b_in_ref[...]
    # h: (M, F) float32 residual stream

    # --- dilated residual layers (static unrolled loop; dilations are static) ---
    for l, d in enumerate(dilations):
        h_b = h.astype(jnp.bfloat16)                     # (M, F) bf16 center tap
        # Store current h into the center of the zero-halo buffer (shifted reads only).
        halo_ref[:, pl.ds(max_d, T), :] = h_b.reshape(NB, T, F)
        # Shifted taps: static-offset batched VMEM slices (zero padded at ends).
        h_m = halo_ref[:, pl.ds(max_d - d, T), :].reshape(M, F)   # h[t - d]
        h_p = halo_ref[:, pl.ds(max_d + d, T), :].reshape(M, F)   # h[t + d]

        # 3-tap dilated conv as three accumulating MXU dots (no lane concat).
        conv = (jnp.dot(h_m, wd_ref[l, 0], preferred_element_type=jnp.float32)
                + jnp.dot(h_b, wd_ref[l, 1], preferred_element_type=jnp.float32)
                + jnp.dot(h_p, wd_ref[l, 2], preferred_element_type=jnp.float32)
                + bd_ref[l])
        r = jnp.maximum(conv, 0.0).astype(jnp.bfloat16)   # ReLU, then bf16 operand
        out1 = jnp.dot(r, w1_ref[l],
                       preferred_element_type=jnp.float32) + b1_ref[l]
        # dropout == identity (eval mode)
        h = h + out1

    # --- output 1x1 conv (lane-dense padded C, bf16 writeback) ---
    y = jnp.dot(h.astype(jnp.bfloat16), w_out_ref[...],
                preferred_element_type=jnp.float32) + b_out_ref[...]
    out_ref[...] = y.reshape(NB, T, -1).astype(out_ref.dtype)


def refinement_forward(x_ntc, params, dilations, batch_per_step=None):
    """x_ntc: (N, T, dim) float32.  Returns (N, T, num_classes) float32."""
    N, T, dim = x_ntc.shape
    w_in, b_in, wd, bd, w1, b1, w_out, b_out = params
    L = wd.shape[0]
    F = w_in.shape[1]
    C = w_out.shape[1]
    C_pad = pl.cdiv(C, 128) * 128          # lane-dense output width
    max_d = max(dilations)

    # Choose batch-per-step so the grid has at most num_tensorcores steps:
    # single big step on 1-TC chips, one big step per core on megacore chips.
    if batch_per_step is None:
        cores = _num_tensorcores()
        steps = cores if (cores > 1 and N % cores == 0) else 1
        batch_per_step = max(1, N // steps)
    NB = batch_per_step
    assert N % NB == 0, "N must be divisible by batch_per_step"
    G = N // NB

    # Prepack weights: bf16 matmul operands; biases stay f32.
    wd_b = wd.astype(jnp.bfloat16)                       # (L, 3, F, F)
    w_in_b = w_in.astype(jnp.bfloat16)
    w1_b = w1.astype(jnp.bfloat16)
    w_out_p = jnp.pad(w_out, ((0, 0), (0, C_pad - C))).astype(jnp.bfloat16)
    b_out_p = jnp.pad(b_out, ((0, 0), (0, C_pad - C)))
    x_b = x_ntc.astype(jnp.bfloat16)       # halve input DMA

    kernel = functools.partial(_refinement_kernel,
                               dilations=tuple(dilations), max_d=max_d)

    full = lambda shape: pl.BlockSpec(shape, lambda g: (0,) * len(shape))

    out = pl.pallas_call(
        kernel,
        out_shape=jax.ShapeDtypeStruct((N, T, C_pad), jnp.bfloat16),
        grid=(G,),
        in_specs=[
            pl.BlockSpec((NB, T, dim), lambda g: (g, 0, 0)),   # x (NB batch elems)
            full((dim, F)),            # w_in  (bf16)
            full((1, F)),              # b_in  (f32)
            full((L, 3, F, F)),        # wd taps [t-d, t, t+d] (bf16)
            full((L, 1, F)),           # bd    (f32)
            full((L, F, F)),           # w1    (bf16)
            full((L, 1, F)),           # b1    (f32)
            full((F, C_pad)),          # w_out (bf16, lane-padded)
            full((1, C_pad)),          # b_out (f32, lane-padded)
        ],
        out_specs=pl.BlockSpec((NB, T, C_pad), lambda g: (g, 0, 0)),
        scratch_shapes=[pltpu.VMEM((NB, T + 2 * max_d, F), jnp.bfloat16)],  # zero-halo h
        compiler_params=pltpu.CompilerParams(
            dimension_semantics=("parallel",),
            vmem_limit_bytes=32 * 1024 * 1024),
    )(x_b, w_in_b, b_in, wd_b, bd, w1_b, b1, w_out_p, b_out_p)

    return out[:, :, :C].astype(jnp.float32)


def reference_forward(x_ntc, params, dilations):
    """Pure-JAX f32 reference with identical math (for validation)."""
    w_in, b_in, wd, bd, w1, b1, w_out, b_out = params
    N, T, _ = x_ntc.shape
    F = w_in.shape[1]
    h = x_ntc @ w_in + b_in
    for l, d in enumerate(dilations):
        zeros = jnp.zeros((N, d, F), h.dtype)
        h_m = jnp.concatenate([zeros, h[:, :-d]], axis=1)
        h_p = jnp.concatenate([h[:, d:], zeros], axis=1)
        conv = h_m @ wd[l, 0] + h @ wd[l, 1] + h_p @ wd[l, 2] + bd[l]
        r = jnp.maximum(conv, 0.0)
        h = h + r @ w1[l] + b1[l]
    return h @ w_out + b_out


def init_params(key, num_layers, num_f_maps, dim, num_classes):
    """Deterministic synthetic parameters.

    PyTorch Conv1d weight (out, in, k) is stored here pre-transposed to (in, out)
    per kernel tap so the kernel can do x @ W directly; tap order is
    [left (t-d), center (t), right (t+d)] matching Conv1d cross-correlation.
    """
    ks = jax.random.split(key, 8)
    F = num_f_maps
    scale = 0.1
    w_in = scale * jax.random.normal(ks[0], (dim, F), jnp.float32)
    b_in = scale * jax.random.normal(ks[1], (1, F), jnp.float32)
    wd = scale * jax.random.normal(ks[2], (num_layers, 3, F, F), jnp.float32)
    bd = scale * jax.random.normal(ks[3], (num_layers, 1, F), jnp.float32)
    w1 = scale * jax.random.normal(ks[4], (num_layers, F, F), jnp.float32)
    b1 = scale * jax.random.normal(ks[5], (num_layers, 1, F), jnp.float32)
    w_out = scale * jax.random.normal(ks[6], (F, num_classes), jnp.float32)
    b_out = scale * jax.random.normal(ks[7], (1, num_classes), jnp.float32)
    return (w_in, b_in, wd, bd, w1, b1, w_out, b_out)


if __name__ == "__main__":
    # Small, module-consistent shapes.
    num_layers = 3
    num_f_maps = 32
    dim = 8            # input channels (e.g. logits from previous stage)
    num_classes = 8
    N, T = 2, 64
    dilations = [2 ** i for i in range(num_layers)]   # 1, 2, 4

    key = jax.random.PRNGKey(0)
    k_x, k_p = jax.random.split(key)
    params = init_params(k_p, num_layers, num_f_maps, dim, num_classes)

    # PyTorch layout is (N, C, T); transpose to the kernel's (N, T, C) layout.
    x_nct = jax.random.normal(k_x, (N, dim, T), jnp.float32)
    x_ntc = jnp.transpose(x_nct, (0, 2, 1))

    out = refinement_forward(x_ntc, params, dilations)
    out = jax.block_until_ready(out)

    ref = reference_forward(x_ntc, params, dilations)
    assert out.shape == (N, T, num_classes)
    # bf16 matmul operands / bf16 output store (f32 accumulate) => loosened tolerance.
    max_err = float(jnp.max(jnp.abs(out - ref)))
    assert jnp.allclose(out, ref, atol=5e-2, rtol=5e-2), (
        f"mismatch vs JAX reference (max abs err {max_err})")

    print("KERNEL_OK")
</pallas_src>

<mosaic_0001>
module attributes {stable_mosaic.version = 11 : i64} {
  func.func @_refinement_kernel(%arg0: i32, %arg1: memref<2x64x8xbf16, #tpu.memory_space<vmem>>, %arg2: memref<8x32xbf16, #tpu.memory_space<vmem>>, %arg3: memref<1x32xf32, #tpu.memory_space<vmem>>, %arg4: memref<3x3x32x32xbf16, #tpu.memory_space<vmem>>, %arg5: memref<3x1x32xf32, #tpu.memory_space<vmem>>, %arg6: memref<3x32x32xbf16, #tpu.memory_space<vmem>>, %arg7: memref<3x1x32xf32, #tpu.memory_space<vmem>>, %arg8: memref<32x128xbf16, #tpu.memory_space<vmem>>, %arg9: memref<1x128xf32, #tpu.memory_space<vmem>>, %arg10: memref<2x64x128xbf16, #tpu.memory_space<vmem>>, %arg11: memref<2x72x32xbf16, #tpu.memory_space<vmem>>) attributes {dimension_semantics = [#tpu.dimension_semantics<parallel>], iteration_bounds = array<i64: 1>, scalar_prefetch = 0 : i64, scratch_operands = 1 : i64, tpu.core_type = #tpu.core_type<tc>, window_params = [{transform_indices = @transform_0, window_bounds = array<i64: 2, 64, 8>}, {pipeline_mode = #tpu.pipeline_mode<synchronous>, transform_indices = @transform_1, window_bounds = array<i64: 8, 32>}, {pipeline_mode = #tpu.pipeline_mode<synchronous>, transform_indices = @transform_2, window_bounds = array<i64: 1, 32>}, {pipeline_mode = #tpu.pipeline_mode<synchronous>, transform_indices = @transform_3, window_bounds = array<i64: 3, 3, 32, 32>}, {pipeline_mode = #tpu.pipeline_mode<synchronous>, transform_indices = @transform_4, window_bounds = array<i64: 3, 1, 32>}, {pipeline_mode = #tpu.pipeline_mode<synchronous>, transform_indices = @transform_5, window_bounds = array<i64: 3, 32, 32>}, {pipeline_mode = #tpu.pipeline_mode<synchronous>, transform_indices = @transform_6, window_bounds = array<i64: 3, 1, 32>}, {pipeline_mode = #tpu.pipeline_mode<synchronous>, transform_indices = @transform_7, window_bounds = array<i64: 32, 128>}, {pipeline_mode = #tpu.pipeline_mode<synchronous>, transform_indices = @transform_8, window_bounds = array<i64: 1, 128>}, {transform_indices = @transform_9, window_bounds = array<i64: 2, 64, 128>}]} {
    %cst = arith.constant 0.000000e+00 : bf16
    %0 = vector.broadcast %cst : bf16 to vector<2x4x32xbf16>
    %c0 = arith.constant 0 : index
    %c0_0 = arith.constant 0 : index
    %c0_1 = arith.constant 0 : index
    %1 = vector.load %arg11[%c0, %c0_0, %c0_1] : memref<2x72x32xbf16, #tpu.memory_space<vmem>>, vector<2x4x32xbf16>
    tpu.vector_store %arg11[%c0, %c0_0, %c0_1], %0 {strides = array<i32>} : memref<2x72x32xbf16, #tpu.memory_space<vmem>>, vector<2x4x32xbf16>,
    %cst_2 = arith.constant 0.000000e+00 : bf16
    %2 = vector.broadcast %cst_2 : bf16 to vector<2x4x32xbf16>
    %c0_3 = arith.constant 0 : index
    %c68 = arith.constant 68 : index
    %c0_4 = arith.constant 0 : index
    %3 = vector.load %arg11[%c0_3, %c68, %c0_4] : memref<2x72x32xbf16, #tpu.memory_space<vmem>>, vector<2x4x32xbf16>
    tpu.vector_store %arg11[%c0_3, %c68, %c0_4], %2 {strides = array<i32>} : memref<2x72x32xbf16, #tpu.memory_space<vmem>>, vector<2x4x32xbf16>,
    %c0_5 = arith.constant 0 : index
    %c0_6 = arith.constant 0 : index
    %c0_7 = arith.constant 0 : index
    %4 = vector.load %arg1[%c0_5, %c0_6, %c0_7] : memref<2x64x8xbf16, #tpu.memory_space<vmem>>, vector<2x64x8xbf16>
    %5 = vector.shape_cast %4 : vector<2x64x8xbf16> to vector<128x8xbf16>
    %c0_8 = arith.constant 0 : index
    %c0_9 = arith.constant 0 : index
    %6 = vector.load %arg2[%c0_8, %c0_9] : memref<8x32xbf16, #tpu.memory_space<vmem>>, vector<8x32xbf16>
    %cst_10 = arith.constant dense<0.000000e+00> : vector<128x32xf32>
    %7 = tpu.matmul %5, %6, %cst_10 {dimension_numbers = #tpu.dot_dimension_numbers<[1], [0], [0], [1], [0, 0, 1, 1], [], []>} : vector<128x8xbf16>, vector<8x32xbf16>, vector<128x32xf32> -> vector<128x32xf32>
    %c0_11 = arith.constant 0 : index
    %c0_12 = arith.constant 0 : index
    %8 = vector.load %arg3[%c0_11, %c0_12] : memref<1x32xf32, #tpu.memory_space<vmem>>, vector<1x32xf32>
    %9 = vector.broadcast %8 : vector<1x32xf32> to vector<128x32xf32>
    %10 = arith.addf %7, %9 : vector<128x32xf32>
    %11 = arith.truncf %10 : vector<128x32xf32> to vector<128x32xbf16>
    %12 = vector.shape_cast %11 : vector<128x32xbf16> to vector<2x64x32xbf16>
    %c0_13 = arith.constant 0 : index
    %c4 = arith.constant 4 : index
    %c0_14 = arith.constant 0 : index
    %13 = vector.load %arg11[%c0_13, %c4, %c0_14] : memref<2x72x32xbf16, #tpu.memory_space<vmem>>, vector<2x64x32xbf16>
    tpu.vector_store %arg11[%c0_13, %c4, %c0_14], %12 {strides = array<i32>} : memref<2x72x32xbf16, #tpu.memory_space<vmem>>, vector<2x64x32xbf16>,
    %c0_15 = arith.constant 0 : index
    %c3 = arith.constant 3 : index
    %c0_16 = arith.constant 0 : index
    %14 = vector.load %arg11[%c0_15, %c3, %c0_16] : memref<2x72x32xbf16, #tpu.memory_space<vmem>>, vector<2x64x32xbf16>
    %15 = vector.shape_cast %14 : vector<2x64x32xbf16> to vector<128x32xbf16>
    %c0_17 = arith.constant 0 : index
    %c5 = arith.constant 5 : index
    %c0_18 = arith.constant 0 : index
    %16 = vector.load %arg11[%c0_17, %c5, %c0_18] : memref<2x72x32xbf16, #tpu.memory_space<vmem>>, vector<2x64x32xbf16>
    %17 = vector.shape_cast %16 : vector<2x64x32xbf16> to vector<128x32xbf16>
    %c0_19 = arith.constant 0 : index
    %c0_20 = arith.constant 0 : index
    %c0_21 = arith.constant 0 : index
    %c0_22 = arith.constant 0 : index
    %18 = vector.load %arg4[%c0_19, %c0_20, %c0_21, %c0_22] : memref<3x3x32x32xbf16, #tpu.memory_space<vmem>>, vector<1x1x32x32xbf16>
    %19 = vector.shape_cast %18 : vector<1x1x32x32xbf16> to vector<32x32xbf16>
    %cst_23 = arith.constant dense<0.000000e+00> : vector<128x32xf32>
    %20 = tpu.matmul %15, %19, %cst_23 {dimension_numbers = #tpu.dot_dimension_numbers<[1], [0], [0], [1], [0, 0, 1, 1], [], []>} : vector<128x32xbf16>, vector<32x32xbf16>, vector<128x32xf32> -> vector<128x32xf32>
    %c0_24 = arith.constant 0 : index
    %c1 = arith.constant 1 : index
    %c0_25 = arith.constant 0 : index
    %c0_26 = arith.constant 0 : index
    %21 = vector.load %arg4[%c0_24, %c1, %c0_25, %c0_26] : memref<3x3x32x32xbf16, #tpu.memory_space<vmem>>, vector<1x1x32x32xbf16>
    %22 = vector.shape_cast %21 : vector<1x1x32x32xbf16> to vector<32x32xbf16>
    %cst_27 = arith.constant dense<0.000000e+00> : vector<128x32xf32>
    %23 = tpu.matmul %11, %22, %cst_27 {dimension_numbers = #tpu.dot_dimension_numbers<[1], [0], [0], [1], [0, 0, 1, 1], [], []>} : vector<128x32xbf16>, vector<32x32xbf16>, vector<128x32xf32> -> vector<128x32xf32>
    %24 = arith.addf %20, %23 : vector<128x32xf32>
    %c0_28 = arith.constant 0 : index
    %c2 = arith.constant 2 : index
    %c0_29 = arith.constant 0 : index
    %c0_30 = arith.constant 0 : index
    %25 = vector.load %arg4[%c0_28, %c2, %c0_29, %c0_30] : memref<3x3x32x32xbf16, #tpu.memory_space<vmem>>, vector<1x1x32x32xbf16>
    %26 = vector.shape_cast %25 : vector<1x1x32x32xbf16> to vector<32x32xbf16>
    %cst_31 = arith.constant dense<0.000000e+00> : vector<128x32xf32>
    %27 = tpu.matmul %17, %26, %cst_31 {dimension_numbers = #tpu.dot_dimension_numbers<[1], [0], [0], [1], [0, 0, 1, 1], [], []>} : vector<128x32xbf16>, vector<32x32xbf16>, vector<128x32xf32> -> vector<128x32xf32>
    %28 = arith.addf %24, %27 : vector<128x32xf32>
    %c0_32 = arith.constant 0 : index
    %c0_33 = arith.constant 0 : index
    %c0_34 = arith.constant 0 : index
    %29 = vector.load %arg5[%c0_32, %c0_33, %c0_34] : memref<3x1x32xf32, #tpu.memory_space<vmem>>, vector<1x1x32xf32>
    %30 = vector.shape_cast %29 : vector<1x1x32xf32> to vector<1x32xf32>
    %31 = vector.broadcast %30 : vector<1x32xf32> to vector<128x32xf32>
    %32 = arith.addf %28, %31 : vector<128x32xf32>
    %cst_35 = arith.constant 0.000000e+00 : f32
    %33 = vector.broadcast %cst_35 : f32 to vector<128x32xf32>
    %34 = arith.maximumf %32, %33 : vector<128x32xf32>
    %35 = arith.truncf %34 : vector<128x32xf32> to vector<128x32xbf16>
    %c0_36 = arith.constant 0 : index
    %c0_37 = arith.constant 0 : index
    %c0_38 = arith.constant 0 : index
    %36 = vector.load %arg6[%c0_36, %c0_37, %c0_38] : memref<3x32x32xbf16, #tpu.memory_space<vmem>>, vector<1x32x32xbf16>
    %37 = vector.shape_cast %36 : vector<1x32x32xbf16> to vector<32x32xbf16>
    %cst_39 = arith.constant dense<0.000000e+00> : vector<128x32xf32>
    %38 = tpu.matmul %35, %37, %cst_39 {dimension_numbers = #tpu.dot_dimension_numbers<[1], [0], [0], [1], [0, 0, 1, 1], [], []>} : vector<128x32xbf16>, vector<32x32xbf16>, vector<128x32xf32> -> vector<128x32xf32>
    %c0_40 = arith.constant 0 : index
    %c0_41 = arith.constant 0 : index
    %c0_42 = arith.constant 0 : index
    %39 = vector.load %arg7[%c0_40, %c0_41, %c0_42] : memref<3x1x32xf32, #tpu.memory_space<vmem>>, vector<1x1x32xf32>
    %40 = vector.shape_cast %39 : vector<1x1x32xf32> to vector<1x32xf32>
    %41 = vector.broadcast %40 : vector<1x32xf32> to vector<128x32xf32>
    %42 = arith.addf %38, %41 : vector<128x32xf32>
    %43 = arith.addf %10, %42 : vector<128x32xf32>
    %44 = arith.truncf %43 : vector<128x32xf32> to vector<128x32xbf16>
    %45 = vector.shape_cast %44 : vector<128x32xbf16> to vector<2x64x32xbf16>
    %c0_43 = arith.constant 0 : index
    %c4_44 = arith.constant 4 : index
    %c0_45 = arith.constant 0 : index
    %46 = vector.load %arg11[%c0_43, %c4_44, %c0_45] : memref<2x72x32xbf16, #tpu.memory_space<vmem>>, vector<2x64x32xbf16>
    tpu.vector_store %arg11[%c0_43, %c4_44, %c0_45], %45 {strides = array<i32>} : memref<2x72x32xbf16, #tpu.memory_space<vmem>>, vector<2x64x32xbf16>,
    %c0_46 = arith.constant 0 : index
    %c2_47 = arith.constant 2 : index
    %c0_48 = arith.constant 0 : index
    %47 = vector.load %arg11[%c0_46, %c2_47, %c0_48] : memref<2x72x32xbf16, #tpu.memory_space<vmem>>, vector<2x64x32xbf16>
    %48 = vector.shape_cast %47 : vector<2x64x32xbf16> to vector<128x32xbf16>
    %c0_49 = arith.constant 0 : index
    %c6 = arith.constant 6 : index
    %c0_50 = arith.constant 0 : index
    %49 = vector.load %arg11[%c0_49, %c6, %c0_50] : memref<2x72x32xbf16, #tpu.memory_space<vmem>>, vector<2x64x32xbf16>
    %50 = vector.shape_cast %49 : vector<2x64x32xbf16> to vector<128x32xbf16>
    %c1_51 = arith.constant 1 : index
    %c0_52 = arith.constant 0 : index
    %c0_53 = arith.constant 0 : index
    %c0_54 = arith.constant 0 : index
    %51 = vector.load %arg4[%c1_51, %c0_52, %c0_53, %c0_54] : memref<3x3x32x32xbf16, #tpu.memory_space<vmem>>, vector<1x1x32x32xbf16>
    %52 = vector.shape_cast %51 : vector<1x1x32x32xbf16> to vector<32x32xbf16>
    %cst_55 = arith.constant dense<0.000000e+00> : vector<128x32xf32>
    %53 = tpu.matmul %48, %52, %cst_55 {dimension_numbers = #tpu.dot_dimension_numbers<[1], [0], [0], [1], [0, 0, 1, 1], [], []>} : vector<128x32xbf16>, vector<32x32xbf16>, vector<128x32xf32> -> vector<128x32xf32>
    %c1_56 = arith.constant 1 : index
    %c1_57 = arith.constant 1 : index
    %c0_58 = arith.constant 0 : index
    %c0_59 = arith.constant 0 : index
    %54 = vector.load %arg4[%c1_56, %c1_57, %c0_58, %c0_59] : memref<3x3x32x32xbf16, #tpu.memory_space<vmem>>, vector<1x1x32x32xbf16>
    %55 = vector.shape_cast %54 : vector<1x1x32x32xbf16> to vector<32x32xbf16>
    %cst_60 = arith.constant dense<0.000000e+00> : vector<128x32xf32>
    %56 = tpu.matmul %44, %55, %cst_60 {dimension_numbers = #tpu.dot_dimension_numbers<[1], [0], [0], [1], [0, 0, 1, 1], [], []>} : vector<128x32xbf16>, vector<32x32xbf16>, vector<128x32xf32> -> vector<128x32xf32>
    %57 = arith.addf %53, %56 : vector<128x32xf32>
    %c1_61 = arith.constant 1 : index
    %c2_62 = arith.constant 2 : index
    %c0_63 = arith.constant 0 : index
    %c0_64 = arith.constant 0 : index
    %58 = vector.load %arg4[%c1_61, %c2_62, %c0_63, %c0_64] : memref<3x3x32x32xbf16, #tpu.memory_space<vmem>>, vector<1x1x32x32xbf16>
    %59 = vector.shape_cast %58 : vector<1x1x32x32xbf16> to vector<32x32xbf16>
    %cst_65 = arith.constant dense<0.000000e+00> : vector<128x32xf32>
    %60 = tpu.matmul %50, %59, %cst_65 {dimension_numbers = #tpu.dot_dimension_numbers<[1], [0], [0], [1], [0, 0, 1, 1], [], []>} : vector<128x32xbf16>, vector<32x32xbf16>, vector<128x32xf32> -> vector<128x32xf32>
    %61 = arith.addf %57, %60 : vector<128x32xf32>
    %c1_66 = arith.constant 1 : index
    %c0_67 = arith.constant 0 : index
    %c0_68 = arith.constant 0 : index
    %62 = vector.load %arg5[%c1_66, %c0_67, %c0_68] : memref<3x1x32xf32, #tpu.memory_space<vmem>>, vector<1x1x32xf32>
    %63 = vector.shape_cast %62 : vector<1x1x32xf32> to vector<1x32xf32>
    %64 = vector.broadcast %63 : vector<1x32xf32> to vector<128x32xf32>
    %65 = arith.addf %61, %64 : vector<128x32xf32>
    %cst_69 = arith.constant 0.000000e+00 : f32
    %66 = vector.broadcast %cst_69 : f32 to vector<128x32xf32>
    %67 = arith.maximumf %65, %66 : vector<128x32xf32>
    %68 = arith.truncf %67 : vector<128x32xf32> to vector<128x32xbf16>
    %c1_70 = arith.constant 1 : index
    %c0_71 = arith.constant 0 : index
    %c0_72 = arith.constant 0 : index
    %69 = vector.load %arg6[%c1_70, %c0_71, %c0_72] : memref<3x32x32xbf16, #tpu.memory_space<vmem>>, vector<1x32x32xbf16>
    %70 = vector.shape_cast %69 : vector<1x32x32xbf16> to vector<32x32xbf16>
    %cst_73 = arith.constant dense<0.000000e+00> : vector<128x32xf32>
    %71 = tpu.matmul %68, %70, %cst_73 {dimension_numbers = #tpu.dot_dimension_numbers<[1], [0], [0], [1], [0, 0, 1, 1], [], []>} : vector<128x32xbf16>, vector<32x32xbf16>, vector<128x32xf32> -> vector<128x32xf32>
    %c1_74 = arith.constant 1 : index
    %c0_75 = arith.constant 0 : index
    %c0_76 = arith.constant 0 : index
    %72 = vector.load %arg7[%c1_74, %c0_75, %c0_76] : memref<3x1x32xf32, #tpu.memory_space<vmem>>, vector<1x1x32xf32>
    %73 = vector.shape_cast %72 : vector<1x1x32xf32> to vector<1x32xf32>
    %74 = vector.broadcast %73 : vector<1x32xf32> to vector<128x32xf32>
    %75 = arith.addf %71, %74 : vector<128x32xf32>
    %76 = arith.addf %43, %75 : vector<128x32xf32>
    %77 = arith.truncf %76 : vector<128x32xf32> to vector<128x32xbf16>
    %78 = vector.shape_cast %77 : vector<128x32xbf16> to vector<2x64x32xbf16>
    %c0_77 = arith.constant 0 : index
    %c4_78 = arith.constant 4 : index
    %c0_79 = arith.constant 0 : index
    %79 = vector.load %arg11[%c0_77, %c4_78, %c0_79] : memref<2x72x32xbf16, #tpu.memory_space<vmem>>, vector<2x64x32xbf16>
    tpu.vector_store %arg11[%c0_77, %c4_78, %c0_79], %78 {strides = array<i32>} : memref<2x72x32xbf16, #tpu.memory_space<vmem>>, vector<2x64x32xbf16>,
    %c0_80 = arith.constant 0 : index
    %c0_81 = arith.constant 0 : index
    %c0_82 = arith.constant 0 : index
    %80 = vector.load %arg11[%c0_80, %c0_81, %c0_82] : memref<2x72x32xbf16, #tpu.memory_space<vmem>>, vector<2x64x32xbf16>
    %81 = vector.shape_cast %80 : vector<2x64x32xbf16> to vector<128x32xbf16>
    %c0_83 = arith.constant 0 : index
    %c8 = arith.constant 8 : index
    %c0_84 = arith.constant 0 : index
    %82 = vector.load %arg11[%c0_83, %c8, %c0_84] : memref<2x72x32xbf16, #tpu.memory_space<vmem>>, vector<2x64x32xbf16>
    %83 = vector.shape_cast %82 : vector<2x64x32xbf16> to vector<128x32xbf16>
    %c2_85 = arith.constant 2 : index
    %c0_86 = arith.constant 0 : index
    %c0_87 = arith.constant 0 : index
    %c0_88 = arith.constant 0 : index
    %84 = vector.load %arg4[%c2_85, %c0_86, %c0_87, %c0_88] : memref<3x3x32x32xbf16, #tpu.memory_space<vmem>>, vector<1x1x32x32xbf16>
    %85 = vector.shape_cast %84 : vector<1x1x32x32xbf16> to vector<32x32xbf16>
    %cst_89 = arith.constant dense<0.000000e+00> : vector<128x32xf32>
    %86 = tpu.matmul %81, %85, %cst_89 {dimension_numbers = #tpu.dot_dimension_numbers<[1], [0], [0], [1], [0, 0, 1, 1], [], []>} : vector<128x32xbf16>, vector<32x32xbf16>, vector<128x32xf32> -> vector<128x32xf32>
    %c2_90 = arith.constant 2 : index
    %c1_91 = arith.constant 1 : index
    %c0_92 = arith.constant 0 : index
    %c0_93 = arith.constant 0 : index
    %87 = vector.load %arg4[%c2_90, %c1_91, %c0_92, %c0_93] : memref<3x3x32x32xbf16, #tpu.memory_space<vmem>>, vector<1x1x32x32xbf16>
    %88 = vector.shape_cast %87 : vector<1x1x32x32xbf16> to vector<32x32xbf16>
    %cst_94 = arith.constant dense<0.000000e+00> : vector<128x32xf32>
    %89 = tpu.matmul %77, %88, %cst_94 {dimension_numbers = #tpu.dot_dimension_numbers<[1], [0], [0], [1], [0, 0, 1, 1], [], []>} : vector<128x32xbf16>, vector<32x32xbf16>, vector<128x32xf32> -> vector<128x32xf32>
    %90 = arith.addf %86, %89 : vector<128x32xf32>
    %c2_95 = arith.constant 2 : index
    %c2_96 = arith.constant 2 : index
    %c0_97 = arith.constant 0 : index
    %c0_98 = arith.constant 0 : index
    %91 = vector.load %arg4[%c2_95, %c2_96, %c0_97, %c0_98] : memref<3x3x32x32xbf16, #tpu.memory_space<vmem>>, vector<1x1x32x32xbf16>
    %92 = vector.shape_cast %91 : vector<1x1x32x32xbf16> to vector<32x32xbf16>
    %cst_99 = arith.constant dense<0.000000e+00> : vector<128x32xf32>
    %93 = tpu.matmul %83, %92, %cst_99 {dimension_numbers = #tpu.dot_dimension_numbers<[1], [0], [0], [1], [0, 0, 1, 1], [], []>} : vector<128x32xbf16>, vector<32x32xbf16>, vector<128x32xf32> -> vector<128x32xf32>
    %94 = arith.addf %90, %93 : vector<128x32xf32>
    %c2_100 = arith.constant 2 : index
    %c0_101 = arith.constant 0 : index
    %c0_102 = arith.constant 0 : index
    %95 = vector.load %arg5[%c2_100, %c0_101, %c0_102] : memref<3x1x32xf32, #tpu.memory_space<vmem>>, vector<1x1x32xf32>
    %96 = vector.shape_cast %95 : vector<1x1x32xf32> to vector<1x32xf32>
    %97 = vector.broadcast %96 : vector<1x32xf32> to vector<128x32xf32>
    %98 = arith.addf %94, %97 : vector<128x32xf32>
    %cst_103 = arith.constant 0.000000e+00 : f32
    %99 = vector.broadcast %cst_103 : f32 to vector<128x32xf32>
    %100 = arith.maximumf %98, %99 : vector<128x32xf32>
    %101 = arith.truncf %100 : vector<128x32xf32> to vector<128x32xbf16>
    %c2_104 = arith.constant 2 : index
    %c0_105 = arith.constant 0 : index
    %c0_106 = arith.constant 0 : index
    %102 = vector.load %arg6[%c2_104, %c0_105, %c0_106] : memref<3x32x32xbf16, #tpu.memory_space<vmem>>, vector<1x32x32xbf16>
    %103 = vector.shape_cast %102 : vector<1x32x32xbf16> to vector<32x32xbf16>
    %cst_107 = arith.constant dense<0.000000e+00> : vector<128x32xf32>
    %104 = tpu.matmul %101, %103, %cst_107 {dimension_numbers = #tpu.dot_dimension_numbers<[1], [0], [0], [1], [0, 0, 1, 1], [], []>} : vector<128x32xbf16>, vector<32x32xbf16>, vector<128x32xf32> -> vector<128x32xf32>
    %c2_108 = arith.constant 2 : index
    %c0_109 = arith.constant 0 : index
    %c0_110 = arith.constant 0 : index
    %105 = vector.load %arg7[%c2_108, %c0_109, %c0_110] : memref<3x1x32xf32, #tpu.memory_space<vmem>>, vector<1x1x32xf32>
    %106 = vector.shape_cast %105 : vector<1x1x32xf32> to vector<1x32xf32>
    %107 = vector.broadcast %106 : vector<1x32xf32> to vector<128x32xf32>
    %108 = arith.addf %104, %107 : vector<128x32xf32>
    %109 = arith.addf %76, %108 : vector<128x32xf32>
    %110 = arith.truncf %109 : vector<128x32xf32> to vector<128x32xbf16>
    %c0_111 = arith.constant 0 : index
    %c0_112 = arith.constant 0 : index
    %111 = vector.load %arg8[%c0_111, %c0_112] : memref<32x128xbf16, #tpu.memory_space<vmem>>, vector<32x128xbf16>
    %cst_113 = arith.constant dense<0.000000e+00> : vector<128x128xf32>
    %112 = tpu.matmul %110, %111, %cst_113 {dimension_numbers = #tpu.dot_dimension_numbers<[1], [0], [0], [1], [0, 0, 1, 1], [], []>} : vector<128x32xbf16>, vector<32x128xbf16>, vector<128x128xf32> -> vector<128x128xf32>
    %c0_114 = arith.constant 0 : index
    %c0_115 = arith.constant 0 : index
    %113 = vector.load %arg9[%c0_114, %c0_115] : memref<1x128xf32, #tpu.memory_space<vmem>>, vector<1x128xf32>
    %114 = vector.broadcast %113 : vector<1x128xf32> to vector<128x128xf32>
    %115 = arith.addf %112, %114 : vector<128x128xf32>
    %116 = vector.shape_cast %115 : vector<128x128xf32> to vector<2x64x128xf32>
    %117 = arith.truncf %116 : vector<2x64x128xf32> to vector<2x64x128xbf16>
    %c0_116 = arith.constant 0 : index
    %c0_117 = arith.constant 0 : index
    %c0_118 = arith.constant 0 : index
    %118 = vector.load %arg10[%c0_116, %c0_117, %c0_118] : memref<2x64x128xbf16, #tpu.memory_space<vmem>>, vector<2x64x128xbf16>
    tpu.vector_store %arg10[%c0_116, %c0_117, %c0_118], %117 {strides = array<i32>} : memref<2x64x128xbf16, #tpu.memory_space<vmem>>, vector<2x64x128xbf16>,
    return
  }
  func.func @transform_0(%arg0: i32) -> (i32, i32, i32) {
    %c0_i32 = arith.constant 0 : i32
    %c0_i32_0 = arith.constant 0 : i32
    %c0_i32_1 = arith.constant 0 : i32
    return %arg0, %c0_i32, %c0_i32_0 : i32, i32, i32
  }
  func.func @transform_1(%arg0: i32) -> (i32, i32) {
    %c0_i32 = arith.constant 0 : i32
    %c0_i32_0 = arith.constant 0 : i32
    %c0_i32_1 = arith.constant 0 : i32
    return %c0_i32, %c0_i32_0 : i32, i32
  }
  func.func @transform_2(%arg0: i32) -> (i32, i32) {
    %c0_i32 = arith.constant 0 : i32
    %c0_i32_0 = arith.constant 0 : i32
    %c0_i32_1 = arith.constant 0 : i32
    return %c0_i32, %c0_i32_0 : i32, i32
  }
  func.func @transform_3(%arg0: i32) -> (i32, i32, i32, i32) {
    %c0_i32 = arith.constant 0 : i32
    %c0_i32_0 = arith.constant 0 : i32
    %c0_i32_1 = arith.constant 0 : i32
    %c0_i32_2 = arith.constant 0 : i32
    %c0_i32_3 = arith.constant 0 : i32
    return %c0_i32, %c0_i32_0, %c0_i32_1, %c0_i32_2 : i32, i32, i32, i32
  }
  func.func @transform_4(%arg0: i32) -> (i32, i32, i32) {
    %c0_i32 = arith.constant 0 : i32
    %c0_i32_0 = arith.constant 0 : i32
    %c0_i32_1 = arith.constant 0 : i32
    %c0_i32_2 = arith.constant 0 : i32
    return %c0_i32, %c0_i32_0, %c0_i32_1 : i32, i32, i32
  }
  func.func @transform_5(%arg0: i32) -> (i32, i32, i32) {
    %c0_i32 = arith.constant 0 : i32
    %c0_i32_0 = arith.constant 0 : i32
    %c0_i32_1 = arith.constant 0 : i32
    %c0_i32_2 = arith.constant 0 : i32
    return %c0_i32, %c0_i32_0, %c0_i32_1 : i32, i32, i32
  }
  func.func @transform_6(%arg0: i32) -> (i32, i32, i32) {
    %c0_i32 = arith.constant 0 : i32
    %c0_i32_0 = arith.constant 0 : i32
    %c0_i32_1 = arith.constant 0 : i32
    %c0_i32_2 = arith.constant 0 : i32
    return %c0_i32, %c0_i32_0, %c0_i32_1 : i32, i32, i32
  }
  func.func @transform_7(%arg0: i32) -> (i32, i32) {
    %c0_i32 = arith.constant 0 : i32
    %c0_i32_0 = arith.constant 0 : i32
    %c0_i32_1 = arith.constant 0 : i32
    return %c0_i32, %c0_i32_0 : i32, i32
  }
  func.func @transform_8(%arg0: i32) -> (i32, i32) {
    %c0_i32 = arith.constant 0 : i32
    %c0_i32_0 = arith.constant 0 : i32
    %c0_i32_1 = arith.constant 0 : i32
    return %c0_i32, %c0_i32_0 : i32, i32
  }
  func.func @transform_9(%arg0: i32) -> (i32, i32, i32) {
    %c0_i32 = arith.constant 0 : i32
    %c0_i32_0 = arith.constant 0 : i32
    %c0_i32_1 = arith.constant 0 : i32
    return %arg0, %c0_i32, %c0_i32_0 : i32, i32, i32
  }
}

</mosaic_0001>

<bundles_post_ra>
// kernel: tpu_custom_call.1
= control target key start
LH: loop header
LB: loop body
LE: loop exit
PB: predicated region body
PF: predicated region fallthrough
CT: control target
= control target key end

     0   :  { %14 = vsyncpa [#allocation4], 0  ;;  %s5586_s0 = inlined_call_operand.vmem [shape: bf16[2,64,8], index: 0, kind: input, shape index: {}]   ;;  %s5587_s1 = inlined_call_operand.vmem [shape: bf16[8,32], index: 1, kind: input, shape index: {}]   ;;  %s5588_s2 = inlined_call_operand.vmem [shape: f32[1,32], index: 2, kind: input, shape index: {}]   ;;  %s5589_s3 = inlined_call_operand.hbm [shape: bf16[3,3,32,32], index: 3, kind: input, shape index: {}]   ;;  %s5590_s4 = inlined_call_operand.vmem [shape: f32[3,1,32], index: 4, kind: input, shape index: {}]   ;;  %s5591_s5 = inlined_call_operand.vmem [shape: bf16[3,32,32], index: 5, kind: input, shape index: {}]   ;;  %s5592_s6 = inlined_call_operand.vmem [shape: f32[3,1,32], index: 6, kind: input, shape index: {}]   ;;  %s5593_s7 = inlined_call_operand.vmem [shape: bf16[32,128], index: 7, kind: input, shape index: {}]   ;;  %s5594_s8 = inlined_call_operand.vmem [shape: f32[1,128], index: 8, kind: input, shape index: {}]   ;;  %s5595_s9 = inlined_call_operand.hbm [shape: bf16[2,64,128], index: 9, kind: output, shape index: {}]  }
   0x1   :  { %15 = vsyncpa [#allocation5], 0  ;;  %s4440_s30 = smov [#allocation3]   ;;  %s4392_s13 = scalar_lea.hbm %s5589_s3, 2304 }
   0x2   :  { %s27_s10 = sshll.u32 %s4440_s30, 4  ;;  %p4393_p0 = scmp.ne.s32.totalorder %s5589_s3, %s4392_s13  ;;  %s28_s10 = int_to_ptr.vmem [resolvable:$true] %s27_s10 }
   0x3   :  { %p4396_p1 = scmp.lt.u32.totalorder %s4392_s13, %s5589_s3 }
   0x5   :  { %p4398_p2 = pnand %p4396_p1, %p4393_p0 }
   0x7   :  { %4401 = shalt.err (!%p4398_p2)
}
   0x8   :  { %s4402_s18 = scalar_lea.vmem %s28_s10, 2304  ;;  %p4407_p4 = scmp.lt.s32.totalorder %s28_s10, %s28_s10 }
   0x9   :  { %p4403_p3 = scmp.ne.s32.totalorder %s28_s10, %s4402_s18  ;;  %p4408_p5 = scmp.lt.s32.totalorder %s4402_s18, %s4402_s18 }
   0xb   :  { %p4409_p6 = por %p4408_p5, %p4407_p4 }
   0xd   :  { %p4410_p7 = pnand %p4409_p6, %p4403_p3 }
   0xf   :  { %4413 = shalt.err (!%p4410_p7)
}
  0x10   :  { %s4441_s19 = smov 64   ;;  %s4442_s20 = smov 4  }
  0x11   :  { %33 = dma.hbm_to_vmem [thread:$0]  %s5589_s3, 2304, %s28_s10, [#allocation4], %s4441_s19, %s4441_s19, %s4442_s20  }
  0x12   :  { %4436 = dma.done.wait [#allocation4], 2304  }
  0x13   :  { %4437 = vsyncadd [#allocation4], 4294964992  ;;  %vm143_vm0 = vcmask 1043456   ;;  %vm118_vm1 = vcmask 64512   ;;  %v70_v0 = vld [vmem:[%s5587_s1] sm:$0xf] }
  0x14   :  { %4336 = vmatprep.subr.msk.bf16.mxu0 %vm143_vm0, %v70_v0  ;;  %v145_v1 = vsel %vm143_vm0, %v70_v0, 0  ;;  %v4342_v2 = vld [vmem:[%s5586_s0] sm:$0xff]   ;;  %v4343_v3 = vld [vmem:[%s5586_s0 + $0x8] sm:$0xff]   ;;  %v4344_v4 = vld [vmem:[%s5586_s0 + $0x10] sm:$0xff]   ;;  %vm51_vm2 = vcmask 257026   ;;  %v4443_v12 = vmov 0  }
  0x15   :  { %3963 = vmatpush3.bf16.msra.mxu0 %v145_v1  ;;  %3964 = vmatprep.mubr.msk.bf16.mxu0 %vm118_vm1, %v4342_v2  ;;  %v4345_v5 = vld [vmem:[%s5586_s0 + $0x18] sm:$0xff]   ;;  %v4346_v6 = vld [vmem:[%s5586_s0 + $0x20] sm:$0xff]   ;;  %v4347_v7 = vld [vmem:[%s5586_s0 + $0x28] sm:$0xff]   ;;  %52 = vst.msk [vmem:[#allocation2 + $0x20] sm:$0xc] %vm51_vm2, %v4443_v12  ;;  %vm48_vm3 = vcmask 254976  }
  0x16   :  { %v4348_v8 = vld [vmem:[%s5586_s0 + $0x30] sm:$0xff]   ;;  %v4349_v9 = vld [vmem:[%s5586_s0 + $0x38] sm:$0xff]   ;;  %v4351_v11 = vld [vmem:[#allocation3 + $0x18] sm:$0xff]   ;;  %53 = vst.msk [vmem:[#allocation2 + $0x44] sm:$0xc] %vm51_vm2, %v4443_v12  ;;  %vm292_vm4 = vcmask 1041408  }
  0x17   :  { %v4350_v10 = vld [vmem:[#allocation3 + $0x10] sm:$0xff]   ;;  %49 = vst.msk [vmem:[#allocation2] sm:$0x3] %vm48_vm3, %v4443_v12  ;;  %50 = vst.msk [vmem:[#allocation2 + $0x24] sm:$0x3] %vm48_vm3, %v4443_v12  ;;  %v4352_v13 = vld [vmem:[#allocation3] sm:$0xff]  }
  0x18   :  { %3965 = vmatmul.mubr.msk.bf16.vlgmr.msra.gmra.mrb[0].mxu0 %vm118_vm1, %v4343_v3  ;;  %3980 = vmatprep.subr.bf16.mxu1 %v4350_v10  ;;  %v4356_v14 = vld [vmem:[%s5591_s5] sm:$0xff]   ;;  %v4357_v15 = vld [vmem:[%s5591_s5 + $0x8] sm:$0xff]   ;;  %vm293_vm5 = vcmask 1045508   ;;  %vm709_vm6 = vcmask 261120   ;;  %vm360_vm8 = vcmask 257024   ;;  %v4353_v36 = vld [vmem:[#allocation3 + $0x8] sm:$0xff]  }
  0x19   :  { %3968 = vmatprep.mubr.msk.bf16.mxu0 %vm118_vm1, %v4344_v4  ;;  %3981 = vmatpush3.bf16.msra.mxu1 %v4350_v10  ;;  %v4558_v16 = vld [vmem:[%s5588_s2] ss:$0 sm:$0xff]  ;;  %vm4578_vm7 = vmor %vm292_vm4, %vm293_vm5  ;;  %v4608_v50 = vld [vmem:[#allocation3 + $0x20] sm:$0xff]   ;;  %vm396_vm9 = vsmask.f32 2304  ;;  %vm1539_vm15 = vcmask 1042432  }
  0x1a   :  { %3982 = vmatprep.subr.bf16.mxu1 %v4351_v11  ;;  %4040 = vmatprep.subr.bf16.mxu0 %v4356_v14  ;;  %vm397_vm10 = vsmask.f32 6416  ;;  %vm579_vm12 = vsmask.f32 1280  ;;  %vm580_vm13 = vsmask.f32 5392 }
  0x1b   :  { %4041 = vmatpush3.bf16.msra.mxu0 %v4356_v14  ;;  %vm4680_vm11 = vmor %vm396_vm9, %vm397_vm10  ;;  %vm1540_vm0 = vcmask 1046532   ;;  %vm1600_vm4 = vcmask 1040384   ;;  %vm1601_vm5 = vcmask 1044484  }
  0x1c   :  { %4042 = vmatprep.subr.bf16.mxu0 %v4357_v15  ;;  %vm4889_vm14 = vmor %vm579_vm12, %vm580_vm13 }
  0x1d   :  { %3983 = vmatpush3.bf16.msra.mxu1 %v4351_v11  ;;  %vm5257_vm9 = vmor %vm1600_vm4, %vm1601_vm5 }
  0x1e   :  { %4000 = vmatprep.subr.bf16.mxu1 %v4352_v13 }
  0x1f   :  { %4043 = vmatpush3.bf16.msra.mxu0 %v4357_v15 }
  0x20   :  { %3969 = vmatmul.mubr.msk.bf16.gmra.mrb[4].mxu0 %vm118_vm1, %v4345_v5 }
  0x21   :  { %3972 = vmatprep.mubr.msk.bf16.mxu0 %vm118_vm1, %v4346_v6 }
  0x28   :  { %3973 = vmatmul.mubr.msk.bf16.gmra.mrb[8].mxu0 %vm118_vm1, %v4347_v7 }
  0x29   :  { %3976 = vmatprep.mubr.msk.bf16.mxu0 %vm118_vm1, %v4348_v8 }
  0x30   :  { %3977 = vmatmul.mubr.msk.bf16.gmra.mrb[12].mxu0 %vm118_vm1, %v4349_v9  ;;  %vm5134_vm1 = vmor %vm1539_vm15, %vm1540_vm0 }
  0xeb   :  { %v3966_v17 = vpop.f32.mrb[0].mxu0 }
  0xec   :  { %v4561_v18 = vadd.f32 %v3966_v17, %v4558_v16  ;;  %v181_v19 = vpop.f32.mrb[1].mxu0 }
  0xed   :  { %v4564_v20 = vadd.f32 %v4558_v16, %v181_v19  ;;  %v3967_v21 = vpop.f32.mrb[2].mxu0 }
  0xee   :  { %v3714_v22 = vpack.c.bf16 %v4561_v18, %v4561_v18  ;;  %v4569_v23 = vadd.f32 %v3967_v21, %v4558_v16  ;;  %v184_v24 = vpop.f32.mrb[3].mxu0 }
  0xef   :  { %v3712_v25 = vpack.c.bf16 %v4564_v20, %v4564_v20  ;;  %v4574_v26 = vadd.f32 %v4558_v16, %v184_v24 }
  0xf0   :  { %v300_v27 = vrot.slane %v3714_v22, 6  ;;  %v3715_v28 = vpack.c.bf16 %v4569_v23, %v4569_v23  ;;  %v245_v34 = vpack.c.bf16 %v4569_v23, %v4561_v18 }
  0xf1   :  { %v295_v29 = vrot.slane %v3712_v25, 6  ;;  %v3713_v31 = vpack.c.bf16 %v4574_v26, %v4574_v26  ;;  %v244_v32 = vpack.c.bf16 %v4574_v26, %v4564_v20 }
  0xf2   :  { %v302_v33 = vrot.slane %v300_v27, 4  ;;  %v303_v35 = vrot.slane %v3715_v28, 6 }
  0xf3   :  { %v296_v37 = vrot.slane %v295_v29, 4  ;;  %359 = vst.msk [vmem:[#allocation2] sm:$0xc] %vm51_vm2, %v295_v29  ;;  %v297_v38 = vrot.slane %v3713_v31, 6  ;;  %v3970_v39 = vpop.f32.mrb[4].mxu0  ;;  %3984 = vmatprep.mubr.msk.bf16.mxu1 %vm709_vm6, %v244_v32 }
  0xf4   :  { %v304_v40 = vsel %vm4578_vm7, %v302_v33, %v303_v35  ;;  %v4593_v41 = vadd.f32 %v3970_v39, %v4558_v16  ;;  %v197_v42 = vpop.f32.mrb[5].mxu0  ;;  %3985 = vmatmul.mubr.msk.bf16.vlgmr.msra.gmra.mrb[0].mxu1 %vm709_vm6, %v245_v34  ;;  %v305_v56 = vrot.slane %v303_v35, 4 }
  0xf5   :  { %363 = vst.msk [vmem:[#allocation2 + $0xc] sm:$0xf] %vm360_vm8, %v304_v40  ;;  %v298_v43 = vsel %vm4578_vm7, %v296_v37, %v297_v38  ;;  %v299_v44 = vrot.slane %v297_v38, 4  ;;  %v4600_v45 = vadd.f32 %v4558_v16, %v197_v42  ;;  %4001 = vmatpush3.bf16.msra.mxu1 %v4352_v13  ;;  %v3971_v46 = vpop.f32.mrb[6].mxu0 }
  0xf6   :  { %361 = vst.msk [vmem:[#allocation2 + $0x4] sm:$0xf] %vm360_vm8, %v298_v43  ;;  %v3718_v47 = vpack.c.bf16 %v4593_v41, %v4593_v41  ;;  %v4606_v48 = vadd.f32 %v3971_v46, %v4558_v16  ;;  %v200_v49 = vpop.f32.mrb[7].mxu0  ;;  %4002 = vmatprep.subr.bf16.mxu1 %v4353_v36 }
  0xf7   :  { %v301_v51 = vsel %vm4578_vm7, %v299_v44, %v300_v27  ;;  %v3716_v52 = vpack.c.bf16 %v4600_v45, %v4600_v45  ;;  %v4615_v53 = vadd.f32 %v4558_v16, %v200_v49 }
  0xf8   :  { %362 = vst.msk [vmem:[#allocation2 + $0x8] sm:$0xf] %vm360_vm8, %v301_v51  ;;  %v312_v54 = vrot.slane %v3718_v47, 6  ;;  %v3719_v55 = vpack.c.bf16 %v4606_v48, %v4606_v48  ;;  %v247_v61 = vpack.c.bf16 %v4606_v48, %v4593_v41 }
  0xf9   :  { %v306_v57 = vrot.slane %v3716_v52, 6  ;;  %v246_v58 = vpack.c.bf16 %v4615_v53, %v4600_v45  ;;  %v3717_v59 = vpack.c.bf16 %v4615_v53, %v4615_v53  ;;  %4003 = vmatpush3.bf16.msra.mxu1 %v4353_v36 }
  0xfa   :  { %v314_v60 = vrot.slane %v312_v54, 4  ;;  %v315_v62 = vrot.slane %v3719_v55, 6  ;;  %v378_v63 = vld [vmem:[#allocation2] sm:$0xe]  ;;  %4020 = vmatprep.subr.bf16.mxu1 %v4608_v50 }
  0xfb   :  { %v307_v0 = vsel %vm4578_vm7, %v305_v56, %v306_v57  ;;  %v308_v1 = vrot.slane %v306_v57, 4  ;;  %v309_v2 = vrot.slane %v3717_v59, 6  ;;  %v3974_v3 = vpop.f32.mrb[8].mxu0  ;;  %3988 = vmatprep.mubr.msk.bf16.mxu1 %vm709_vm6, %v246_v58  ;;  %v400_v4 = vshrl.u32 %v378_v63, 16 }
  0xfc   :  { %364 = vst.msk [vmem:[#allocation2 + $0x10] sm:$0xf] %vm360_vm8, %v307_v0  ;;  %v316_v5 = vsel %vm4578_vm7, %v314_v60, %v315_v62  ;;  %v317_v6 = vrot.slane %v315_v62, 4  ;;  %v4634_v7 = vadd.f32 %v3974_v3, %v4558_v16  ;;  %v213_v8 = vpop.f32.mrb[9].mxu0  ;;  %3989 = vmatmul.mubr.msk.bf16.gmra.mrb[4].mxu1 %vm709_vm6, %v247_v61  ;;  %v403_v9 = vshll.u32 %v378_v63, 16 }
  0xfd   :  { %367 = vst.msk [vmem:[#allocation2 + $0x1c] sm:$0xf] %vm360_vm8, %v316_v5  ;;  %v310_v10 = vsel %vm4578_vm7, %v308_v1, %v309_v2  ;;  %v311_v11 = vrot.slane %v309_v2, 4  ;;  %v4641_v12 = vadd.f32 %v4558_v16, %v213_v8  ;;  %v3975_v13 = vpop.f32.mrb[10].mxu0  ;;  %v4643_v14 = vld [vmem:[#allocation2 + $0x4] sm:$0xf] }
  0xfe   :  { %v402_v15 = vrot.slane %v400_v4, 5  ;;  %368 = vst.msk [vmem:[#allocation2 + $0x20] sm:$0x3] %vm48_vm3, %v317_v6  ;;  %v3722_v17 = vpack.c.bf16 %v4634_v7, %v4634_v7  ;;  %v4650_v19 = vadd.f32 %v3975_v13, %v4558_v16  ;;  %v216_v21 = vpop.f32.mrb[11].mxu0  ;;  %v405_v22 = vrot.slane %v403_v9, 6 }
  0xff   :  { %365 = vst.msk [vmem:[#allocation2 + $0x14] sm:$0xf] %vm360_vm8, %v310_v10  ;;  %v409_v24 = vshrl.u32 %v4643_v14, 16  ;;  %v313_v25 = vsel %vm4578_vm7, %v311_v11, %v312_v54  ;;  %v3720_v27 = vpack.c.bf16 %v4641_v12, %v4641_v12  ;;  %v4658_v28 = vadd.f32 %v4558_v16, %v216_v21  ;;  %v4666_v34 = vld [vmem:[#allocation2 + $0x8] sm:$0xf] }
 0x100   :  { %v412_v29 = vshll.u32 %v4643_v14, 16  ;;  %366 = vst.msk [vmem:[#allocation2 + $0x18] sm:$0xf] %vm360_vm8, %v313_v25  ;;  %v323_v31 = vrot.slane %v3722_v17, 6  ;;  %v249_v32 = vpack.c.bf16 %v4650_v19, %v4634_v7  ;;  %v3723_v33 = vpack.c.bf16 %v4650_v19, %v4650_v19  ;;  %v4700_v1 = vld [vmem:[#allocation2 + $0xc] sm:$0xf] }
 0x101   :  { %v406_v35 = vor.u32 %v405_v22, %v402_v15  ;;  %v318_v36 = vrot.slane %v3720_v27, 6  ;;  %v248_v37 = vpack.c.bf16 %v4658_v28, %v4641_v12  ;;  %v3721_v38 = vpack.c.bf16 %v4658_v28, %v4658_v28 }
 0x102   :  { %v411_v39 = vrot.slane %v409_v24, 5  ;;  %v325_v40 = vrot.slane %v323_v31, 4  ;;  %v326_v42 = vrot.slane %v3723_v33, 6  ;;  %v414_v44 = vrot.slane %v412_v29, 6 }
 0x103   :  { %v407_v43 = vrot.slane %v406_v35, 4  ;;  %v319_v46 = vrot.slane %v318_v36, 4  ;;  %369 = vst.msk [vmem:[#allocation2 + $0x24] sm:$0xc] %vm51_vm2, %v318_v36  ;;  %v320_v47 = vrot.slane %v3721_v38, 6  ;;  %v3978_v49 = vpop.f32.mrb[12].mxu0  ;;  %3992 = vmatprep.mubr.msk.bf16.mxu1 %vm709_vm6, %v248_v37 }
 0x104   :  { %v419_v52 = vshrl.u32 %v4666_v34, 16  ;;  %v422_v54 = vshll.u32 %v4666_v34, 16  ;;  %v327_v55 = vsel %vm4578_vm7, %v325_v40, %v326_v42  ;;  %v328_v56 = vrot.slane %v326_v42, 4  ;;  %v229_v58 = vpop.f32.mrb[13].mxu0  ;;  %3993 = vmatmul.mubr.msk.bf16.gmra.mrb[8].mxu1 %vm709_vm6, %v249_v32  ;;  %v4729_v33 = vld [vmem:[#allocation2 + $0x10] sm:$0xf] }
 0x105   :  { %v4689_v57 = vadd.f32 %v3978_v49, %v4558_v16  ;;  %v415_v59 = vor.u32 %v414_v44, %v411_v39  ;;  %372 = vst.msk [vmem:[#allocation2 + $0x30] sm:$0xf] %vm360_vm8, %v327_v55  ;;  %v321_v60 = vsel %vm4578_vm7, %v319_v46, %v320_v47  ;;  %v322_v61 = vrot.slane %v320_v47, 4  ;;  %v3979_v63 = vpop.f32.mrb[14].mxu0 }
 0x106   :  { %v4696_v62 = vadd.f32 %v4558_v16, %v229_v58  ;;  %v421_v0 = vrot.slane %v419_v52, 5  ;;  %370 = vst.msk [vmem:[#allocation2 + $0x28] sm:$0xf] %vm360_vm8, %v321_v60  ;;  %v4706_v3 = vadd.f32 %v3979_v63, %v4558_v16  ;;  %v232_v4 = vpop.f32.mrb[15].mxu0  ;;  %v424_v11 = vrot.slane %v422_v54, 6 }
 0x107   :  { %v3726_v2 = vpack.c.bf16 %v4689_v57, %v4689_v57  ;;  %v416_v5 = vsel %vm4680_vm11, %v407_v43, %v415_v59  ;;  %v417_v6 = vrot.slane %v415_v59, 4  ;;  %v324_v8 = vsel %vm4578_vm7, %v322_v61, %v323_v31  ;;  %v4739_v42 = vld [vmem:[#allocation2 + $0x14] sm:$0xf]  ;;  %v4741_v43 = vld [vmem:[#allocation2 + $0x18] sm:$0xf] }
 0x108   :  { %v3724_v9 = vpack.c.bf16 %v4696_v62, %v4696_v62  ;;  %v4715_v10 = vadd.f32 %v4558_v16, %v232_v4  ;;  %371 = vst.msk [vmem:[#allocation2 + $0x2c] sm:$0xf] %vm360_vm8, %v324_v8  ;;  %v251_v15 = vpack.c.bf16 %v4706_v3, %v4689_v57  ;;  %v3727_v17 = vpack.c.bf16 %v4706_v3, %v4706_v3 }
 0x109   :  { %v335_v13 = vrot.slane %v3726_v2, 6  ;;  %v429_v21 = vshrl.u32 %v4700_v1, 16  ;;  %v425_v27 = vor.u32 %v424_v11, %v421_v0  ;;  %v432_v36 = vshll.u32 %v4700_v1, 16  ;;  %v4760_v2 = vld [vmem:[#allocation2 + $0x1c] sm:$0xf] }
 0x10a   :  { %v329_v22 = vrot.slane %v3724_v9, 6  ;;  %v250_v25 = vpack.c.bf16 %v4715_v10, %v4696_v62  ;;  %v3725_v16 = vpack.c.bf16 %v4715_v10, %v4715_v10  ;;  %v338_v32 = vrot.slane %v3727_v17, 6  ;;  %v386_v9 = vld [vmem:[#allocation2 + $0x20] sm:$0x3] }
 0x10b   :  { %v337_v31 = vrot.slane %v335_v13, 4  ;;  %v431_v35 = vrot.slane %v429_v21, 5  ;;  %v426_v40 = vsel %vm4680_vm11, %v417_v6, %v425_v27  ;;  %v427_v47 = vrot.slane %v425_v27, 4 }
 0x10c   :  { %v330_v37 = vsel %vm4578_vm7, %v328_v56, %v329_v22  ;;  %v331_v38 = vrot.slane %v329_v22, 4  ;;  %v332_v39 = vrot.slane %v3725_v16, 6  ;;  %3996 = vmatprep.mubr.msk.bf16.mxu1 %vm709_vm6, %v250_v25  ;;  %v340_v46 = vrot.slane %v338_v32, 4  ;;  %v387_v22 = vld [vmem:[#allocation2 + $0x24] sm:$0xe] }
 0x10d   :  { %373 = vst.msk [vmem:[#allocation2 + $0x34] sm:$0xf] %vm360_vm8, %v330_v37  ;;  %v339_v44 = vsel %vm4578_vm7, %v337_v31, %v338_v32  ;;  %3997 = vmatmul.mubr.msk.bf16.gmra.mrb[12].mxu1 %vm709_vm6, %v251_v15  ;;  %v3473_v49 = vcombine.low %v416_v5, %v426_v40  ;;  %v434_v58 = vrot.slane %v432_v36, 6  ;;  %v439_v59 = vshrl.u32 %v4729_v33, 16 }
 0x10e   :  { %376 = vst.msk [vmem:[#allocation2 + $0x40] sm:$0xf] %vm360_vm8, %v339_v44  ;;  %v333_v55 = vsel %vm4578_vm7, %v331_v38, %v332_v39  ;;  %v334_v56 = vrot.slane %v332_v39, 4  ;;  %v442_v60 = vshll.u32 %v4729_v33, 16  ;;  %v449_v61 = vshrl.u32 %v4739_v42, 16 }
 0x10f   :  { %377 = vst.msk [vmem:[#allocation2 + $0x44] sm:$0x3] %vm48_vm3, %v340_v46  ;;  %4004 = vmatprep.mubr.msk.bf16.mxu1 %vm709_vm6, %v3473_v49  ;;  %v452_v63 = vshll.u32 %v4739_v42, 16  ;;  %v5611_v0 = vshrl.u32 %v4741_v43, 16  ;;  %v435_v5 = vor.u32 %v434_v58, %v431_v35  ;;  %v441_v6 = vrot.slane %v439_v59, 5 }
 0x110   :  { %374 = vst.msk [vmem:[#allocation2 + $0x38] sm:$0xf] %vm360_vm8, %v333_v55  ;;  %v336_v4 = vsel %vm4578_vm7, %v334_v56, %v335_v13  ;;  %v5609_v8 = vshll.u32 %v4741_v43, 16  ;;  %v444_v11 = vrot.slane %v442_v60, 6  ;;  %v451_v15 = vrot.slane %v449_v61, 5 }
 0x111   :  { %375 = vst.msk [vmem:[#allocation2 + $0x3c] sm:$0xf] %vm360_vm8, %v336_v4  ;;  %v454_v17 = vrot.slane %v452_v63, 6  ;;  %v461_v13 = vrot.slane %v5611_v0, 5  ;;  %v436_v25 = vsel %vm4680_vm11, %v427_v47, %v435_v5  ;;  %v437_v16 = vrot.slane %v435_v5, 4 }
 0x112   :  { %v464_v27 = vrot.slane %v5609_v8, 6  ;;  %v5600_v31 = vshrl.u32 %v4760_v2, 16  ;;  %v445_v32 = vor.u32 %v444_v11, %v441_v6  ;;  %v5596_v37 = vshll.u32 %v4760_v2, 16  ;;  %v4788_v58 = vld [vmem:[#allocation2 + $0x28] sm:$0xf] }
 0x113   :  { %v455_v35 = vor.u32 %v454_v17, %v451_v15  ;;  %v479_v38 = vshrl.u32 %v386_v9, 16  ;;  %v482_v44 = vshll.u32 %v386_v9, 16  ;;  %v488_v46 = vshrl.u32 %v387_v22, 16  ;;  %v4790_v15 = vld [vmem:[#allocation2 + $0x2c] sm:$0xf]  ;;  %v4355_v17 = vld [vmem:[#allocation3 + $0x28] sm:$0xff]  }
 0x114   :  { %v465_v39 = vor.u32 %v464_v27, %v461_v13  ;;  %v471_v40 = vrot.slane %v5600_v31, 5  ;;  %v446_v47 = vsel %vm4680_vm11, %v437_v16, %v445_v32  ;;  %v447_v49 = vrot.slane %v445_v32, 4  ;;  %v4796_v32 = vld [vmem:[#allocation2 + $0x30] sm:$0xf] }
 0x115   :  { %v457_v55 = vrot.slane %v455_v35, 4  ;;  %v474_v56 = vrot.slane %v5596_v37, 6  ;;  %v3474_v4 = vcombine.low %v436_v25, %v446_v47  ;;  %v481_v6 = vrot.slane %v479_v38, 5 }
 0x116   :  { %v467_v5 = vrot.slane %v465_v39, 4  ;;  %v484_v11 = vrot.slane %v482_v44, 6  ;;  %v456_v9 = vsel %vm4680_vm11, %v447_v49, %v455_v35  ;;  %v490_v27 = vrot.slane %v488_v46, 5 }
 0x117   :  { %v466_v13 = vsel %vm4680_vm11, %v457_v55, %v465_v39  ;;  %v475_v16 = vor.u32 %v474_v56, %v471_v40  ;;  %4005 = vmatmul.mubr.msk.bf16.vlgmr.msra.gmra.mrb[0].mxu1 %vm709_vm6, %v3474_v4  ;;  %v491_v47 = vshll.u32 %v387_v22, 16  ;;  %v5599_v38 = vshrl.u32 %v4788_v58, 16  ;;  %v4809_v55 = vld [vmem:[#allocation2 + $0x34] sm:$0xf] }
 0x118   :  { %v3475_v37 = vcombine.low %v456_v9, %v466_v13  ;;  %v485_v25 = vor.u32 %v484_v11, %v481_v6  ;;  %4021 = vmatpush3.bf16.msra.mxu1 %v4608_v50  ;;  %v5598_v49 = vshll.u32 %v4788_v58, 16  ;;  %v5597_v39 = vshrl.u32 %v4790_v15, 16  ;;  %v4819_v6 = vld [vmem:[#allocation2 + $0x38] sm:$0xf]  ;;  %v4829_v31 = vld [vmem:[#allocation2 + $0x3c] sm:$0xf] }
 0x119   :  { %v476_v44 = vsel %vm4680_vm11, %v467_v5, %v475_v16  ;;  %v477_v35 = vrot.slane %v475_v16, 4  ;;  %v493_v40 = vrot.slane %v491_v47, 6  ;;  %v499_v46 = vrot.slane %v5599_v38, 5  ;;  %4022 = vmatprep.subr.bf16.mxu1 %v4355_v17 }
 0x11a   :  { %4008 = vmatprep.mubr.msk.bf16.mxu1 %vm709_vm6, %v3475_v37  ;;  %v5607_v22 = vshll.u32 %v4790_v15, 16  ;;  %v5605_v50 = vshrl.u32 %v4796_v32, 16  ;;  %v502_v4 = vrot.slane %v5598_v49, 6  ;;  %v509_v37 = vrot.slane %v5597_v39, 5 }
 0x11b   :  { %v486_v56 = vsel %vm4680_vm11, %v477_v35, %v485_v25  ;;  %v5601_v5 = vshll.u32 %v4796_v32, 16  ;;  %v494_v9 = vor.u32 %v493_v40, %v490_v27  ;;  %v5602_v35 = vshrl.u32 %v4809_v55, 16 }
 0x11c   :  { %v3476_v11 = vcombine.low %v476_v44, %v486_v56  ;;  %v512_v13 = vrot.slane %v5607_v22, 6  ;;  %v519_v16 = vrot.slane %v5605_v50, 5  ;;  %v503_v47 = vor.u32 %v502_v4, %v499_v46  ;;  %4023 = vmatpush3.bf16.msra.mxu1 %v4355_v17  ;;  %v395_v50 = vld [vmem:[#allocation2 + $0x44] sm:$0x3] }
 0x11d   :  { %v522_v25 = vrot.slane %v5601_v5, 6  ;;  %v5603_v39 = vshll.u32 %v4809_v55, 16  ;;  %v495_v49 = vrot.slane %v494_v9, 4  ;;  %v5604_v27 = vshrl.u32 %v4819_v6, 16  ;;  %v4844_v5 = vld [vmem:[#allocation2 + $0x40] sm:$0xf] }
 0x11e   :  { %v513_v38 = vor.u32 %v512_v13, %v509_v37  ;;  %v5606_v44 = vshll.u32 %v4819_v6, 16  ;;  %v505_v40 = vrot.slane %v503_v47, 4  ;;  %v529_v46 = vrot.slane %v5602_v35, 5 }
 0x11f   :  { %v523_v56 = vor.u32 %v522_v25, %v519_v16  ;;  %v532_v4 = vrot.slane %v5603_v39, 6  ;;  %4009 = vmatmul.mubr.msk.bf16.gmra.mrb[4].mxu1 %vm709_vm6, %v3476_v11  ;;  %v504_v17 = vsel %vm4680_vm11, %v495_v49, %v503_v47  ;;  %v539_v9 = vrot.slane %v5604_v27, 5 }
 0x120   :  { %v515_v37 = vrot.slane %v513_v38, 4  ;;  %v542_v13 = vrot.slane %v5606_v44, 6  ;;  %v514_v16 = vsel %vm4680_vm11, %v505_v40, %v513_v38  ;;  %v5608_v39 = vshrl.u32 %v4829_v31, 16 }
 0x121   :  { %v525_v25 = vrot.slane %v523_v56, 4  ;;  %v533_v35 = vor.u32 %v532_v4, %v529_v46  ;;  %v3477_v11 = vcombine.low %v504_v17, %v514_v16  ;;  %v5610_v27 = vshll.u32 %v4829_v31, 16  ;;  %v575_v46 = vld [vmem:[#allocation2] sm:$0xc] }
 0x122   :  { %v524_v49 = vsel %vm4680_vm11, %v515_v37, %v523_v56  ;;  %v543_v47 = vor.u32 %v542_v13, %v539_v9  ;;  %v549_v38 = vrot.slane %v5608_v39, 5  ;;  %v5613_v40 = vshrl.u32 %v4844_v5, 16 }
 0x123   :  { %v534_v44 = vsel %vm4680_vm11, %v525_v25, %v533_v35  ;;  %v535_v22 = vrot.slane %v533_v35, 4  ;;  %4012 = vmatprep.mubr.msk.bf16.mxu1 %vm709_vm6, %v3477_v11  ;;  %v552_v56 = vrot.slane %v5610_v27, 6  ;;  %v5612_v37 = vshll.u32 %v4844_v5, 16 }
 0x124   :  { %v3478_v4 = vcombine.low %v524_v49, %v534_v44  ;;  %v545_v17 = vrot.slane %v543_v47, 4  ;;  %v559_v35 = vrot.slane %v5613_v40, 5  ;;  %v567_v13 = vshrl.u32 %v395_v50, 16 }
 0x125   :  { %v544_v9 = vsel %vm4680_vm11, %v535_v22, %v543_v47  ;;  %v570_v16 = vshll.u32 %v395_v50, 16  ;;  %v553_v25 = vor.u32 %v552_v56, %v549_v38  ;;  %v562_v39 = vrot.slane %v5612_v37, 6 }
 0x126   :  { %v583_v11 = vshrl.u32 %v575_v46, 16  ;;  %v586_v44 = vshll.u32 %v575_v46, 16  ;;  %v569_v49 = vrot.slane %v567_v13, 5  ;;  %v591_v27 = vrot.slane %v409_v24, 6 }
 0x127   :  { %v572_v8 = vrot.slane %v570_v16, 6  ;;  %v592_v0 = vrot.slane %v412_v29, 7  ;;  %4013 = vmatmul.mubr.msk.bf16.gmra.mrb[8].mxu1 %vm709_vm6, %v3478_v4  ;;  %v554_v22 = vsel %vm4680_vm11, %v545_v17, %v553_v25  ;;  %v555_v50 = vrot.slane %v553_v25, 4 }
 0x128   :  { %v563_v47 = vor.u32 %v562_v39, %v559_v35  ;;  %v585_v38 = vrot.slane %v583_v11, 6  ;;  %v3479_v56 = vcombine.low %v544_v9, %v554_v22  ;;  %v588_v40 = vrot.slane %v586_v44, 7  ;;  %v576_v44 = vld [vmem:[#allocation2 + $0x20] sm:$0x7] }
 0x129   :  { %v573_v37 = vor.u32 %v572_v8, %v569_v49  ;;  %v593_v46 = vor.u32 %v592_v0, %v591_v27  ;;  %v596_v14 = vrot.slane %v419_v52, 6  ;;  %v597_v24 = vrot.slane %v422_v54, 7 }
 0x12a   :  { %v564_v13 = vsel %vm4680_vm11, %v555_v50, %v563_v47  ;;  %v565_v16 = vrot.slane %v563_v47, 4  ;;  %4016 = vmatprep.mubr.msk.bf16.mxu1 %vm709_vm6, %v3479_v56  ;;  %v589_v29 = vor.u32 %v588_v40, %v585_v38  ;;  %v601_v39 = vrot.slane %v429_v21, 6  ;;  %v577_v50 = vld [vmem:[#allocation2 + $0x24] sm:$0xc] }
 0x12b   :  { %v595_v4 = vrot.slane %v593_v46, 4  ;;  %v602_v0 = vrot.slane %v432_v36, 7  ;;  %v598_v34 = vor.u32 %v597_v24, %v596_v14  ;;  %v606_v54 = vrot.slane %v439_v59, 6 }
 0x12c   :  { %v574_v8 = vsel %vm4680_vm11, %v565_v16, %v573_v37  ;;  %v607_v27 = vrot.slane %v442_v60, 7  ;;  %v590_v40 = vrot.slane %v589_v29, 4  ;;  %v611_v51 = vrot.slane %v449_v61, 6 }
 0x12d   :  { %v3480_v21 = vcombine.low %v564_v13, %v574_v8  ;;  %v603_v1 = vor.u32 %v602_v0, %v601_v39  ;;  %v599_v36 = vsel %vm4889_vm14, %v595_v4, %v598_v34  ;;  %v600_v17 = vrot.slane %v598_v34, 4 }
 0x12e   :  { %v608_v37 = vor.u32 %v607_v27, %v606_v54  ;;  %v612_v9 = vrot.slane %v452_v63, 7  ;;  %v594_v59 = vsel %vm4889_vm14, %v590_v40, %v593_v46  ;;  %v5620_v33 = vshrl.u32 %v4741_v43, 16 }
 0x12f   :  { %v605_v35 = vrot.slane %v603_v1, 4  ;;  %v5621_v25 = vshll.u32 %v4741_v43, 16  ;;  %4017 = vmatmul.mubr.msk.bf16.gmra.mrb[12].mxu1 %vm709_vm6, %v3480_v21  ;;  %v3491_v61 = vcombine.low %v594_v59, %v599_v36  ;;  %v5622_v47 = vshrl.u32 %v4760_v2, 16 }
 0x130   :  { %v616_v60 = vrot.slane %v5620_v33, 6  ;;  %v610_v49 = vrot.slane %v608_v37, 4  ;;  %v613_v22 = vor.u32 %v612_v9, %v611_v51  ;;  %v5623_v56 = vshll.u32 %v4760_v2, 16 }
 0x131   :  { %v617_v11 = vrot.slane %v5621_v25, 7  ;;  %v609_v42 = vsel %vm4889_vm14, %v605_v35, %v608_v37  ;;  %v621_v38 = vrot.slane %v5622_v47, 6  ;;  %4024 = vmatprep.mubr.msk.bf16.mxu1 %vm709_vm6, %v3491_v61  ;;  %v627_v13 = vshrl.u32 %v576_v44, 16 }
 0x132   :  { %v622_v46 = vrot.slane %v5623_v56, 7  ;;  %v615_v43 = vrot.slane %v613_v22, 4  ;;  %v604_v16 = vsel %vm4889_vm14, %v600_v17, %v603_v1  ;;  %v630_v14 = vshll.u32 %v576_v44, 16 }
 0x133   :  { %v618_v63 = vor.u32 %v617_v11, %v616_v60  ;;  %v636_v24 = vshrl.u32 %v577_v50, 16  ;;  %v3492_v29 = vcombine.low %v604_v16, %v609_v42  ;;  %v639_v39 = vshll.u32 %v577_v50, 16 }
 0x134   :  { %v5624_v0 = vshrl.u32 %v4788_v58, 16  ;;  %v614_v2 = vsel %vm4889_vm14, %v610_v49, %v613_v22  ;;  %v623_v34 = vor.u32 %v622_v46, %v621_v38  ;;  %v629_v54 = vrot.slane %v627_v13, 6 }
 0x135   :  { %v619_v4 = vsel %vm4889_vm14, %v615_v43, %v618_v63  ;;  %v632_v27 = vrot.slane %v630_v14, 7  ;;  %v638_v21 = vrot.slane %v636_v24, 6  ;;  %v641_v40 = vrot.slane %v639_v39, 7 }
 0x136   :  { %v644_v8 = vrot.slane %v5624_v0, 6  ;;  %v5625_v1 = vshll.u32 %v4788_v58, 16  ;;  %v5626_v36 = vshrl.u32 %v4790_v15, 16  ;;  %v3493_v37 = vcombine.low %v614_v2, %v619_v4 }
 0x137   :  { %v620_v9 = vrot.slane %v618_v63, 4  ;;  %v5627_v59 = vshll.u32 %v4790_v15, 16  ;;  %4025 = vmatmul.mubr.msk.bf16.vlgmr.msra.gmra.mrb[0].mxu1 %vm709_vm6, %v3492_v29  ;;  %v642_v33 = vor.u32 %v641_v40, %v638_v21  ;;  %v5628_v25 = vshrl.u32 %v4796_v32, 16 }
 0x138   :  { %v645_v51 = vrot.slane %v5625_v1, 7  ;;  %v649_v17 = vrot.slane %v5626_v36, 6  ;;  %v5629_v44 = vshll.u32 %v4796_v32, 16  ;;  %4028 = vmatprep.mubr.msk.bf16.mxu1 %vm709_vm6, %v3493_v37  ;;  %v625_v58 = vrot.slane %v623_v34, 4 }
 0x139   :  { %v650_v35 = vrot.slane %v5627_v59, 7  ;;  %v654_v11 = vrot.slane %v5628_v25, 6  ;;  %v633_v49 = vor.u32 %v632_v27, %v629_v54  ;;  %v5630_v50 = vshrl.u32 %v4819_v6, 16 }
 0x13a   :  { %v646_v60 = vor.u32 %v645_v51, %v644_v8  ;;  %v655_v61 = vrot.slane %v5629_v44, 7  ;;  %v643_v15 = vrot.slane %v642_v33, 4  ;;  %v5631_v47 = vshrl.u32 %v4809_v55, 16 }
 0x13b   :  { %v651_v22 = vor.u32 %v650_v35, %v649_v17  ;;  %v664_v42 = vrot.slane %v5630_v50, 6  ;;  %v5632_v56 = vshll.u32 %v4809_v55, 16  ;;  %v624_v32 = vsel %vm4889_vm14, %v620_v9, %v623_v34  ;;  %v578_v34 = vld [vmem:[#allocation2 + $0x44] sm:$0x7] }
 0x13c   :  { %v648_v63 = vrot.slane %v646_v60, 4  ;;  %v659_v38 = vrot.slane %v5631_v47, 6  ;;  %v5633_v43 = vshll.u32 %v4819_v6, 16  ;;  %v656_v14 = vor.u32 %v655_v61, %v654_v11  ;;  %v4358_v47 = vld [vmem:[#allocation3 + $0x40] sm:$0xff]  }
 0x13d   :  { %v660_v46 = vrot.slane %v5632_v56, 7  ;;  %v5634_v24 = vshrl.u32 %v4829_v31, 16  ;;  %v5635_v4 = vshll.u32 %v4829_v31, 16  ;;  %v634_v55 = vsel %vm4889_vm14, %v625_v58, %v633_v49  ;;  %4060 = vmatprep.subr.bf16.mxu0 %v4358_v47 }
 0x13e   :  { %v665_v13 = vrot.slane %v5633_v43, 7  ;;  %v652_v16 = vsel %vm4889_vm14, %v648_v63, %v651_v22  ;;  %v3494_v8 = vcombine.low %v624_v32, %v634_v55  ;;  %v647_v2 = vsel %vm4889_vm14, %v643_v15, %v646_v60 }
 0x13f   :  { %v669_v29 = vrot.slane %v5634_v24, 6  ;;  %v670_v39 = vrot.slane %v5635_v4, 7  ;;  %v661_v6 = vor.u32 %v660_v46, %v659_v38  ;;  %v3495_v54 = vcombine.low %v647_v2, %v652_v16  ;;  %v3509_v38 = vld [vmem:[%s5590_s4] ss:$0 sm:$0xff] }
 0x140   :  { %v666_v0 = vor.u32 %v665_v13, %v664_v42  ;;  %4029 = vmatmul.mubr.msk.bf16.gmra.mrb[4].mxu1 %vm709_vm6, %v3494_v8  ;;  %v653_v27 = vrot.slane %v651_v22, 4  ;;  %v658_v21 = vrot.slane %v656_v14, 4  ;;  %v5636_v31 = vshrl.u32 %v4844_v5, 16 }
 0x141   :  { %v671_v1 = vor.u32 %v670_v39, %v669_v29  ;;  %4032 = vmatprep.mubr.msk.bf16.mxu1 %vm709_vm6, %v3495_v54  ;;  %v5637_v36 = vshll.u32 %v4844_v5, 16  ;;  %v680_v37 = vshrl.u32 %v578_v34, 16  ;;  %v683_v9 = vshll.u32 %v578_v34, 16  ;;  %v4359_v34 = vld [vmem:[#allocation3 + $0x48] sm:$0xff]  }
 0x142   :  { %v668_v40 = vrot.slane %v666_v0, 4  ;;  %v674_v51 = vrot.slane %v5636_v31, 6  ;;  %v663_v59 = vrot.slane %v661_v6, 4  ;;  %v662_v35 = vsel %vm4889_vm14, %v658_v21, %v661_v6 }
 0x143   :  { %v675_v17 = vrot.slane %v5637_v36, 7  ;;  %v657_v60 = vsel %vm4889_vm14, %v653_v27, %v656_v14  ;;  %v682_v11 = vrot.slane %v680_v37, 6  ;;  %v685_v44 = vrot.slane %v683_v9, 7 }
 0x144   :  { %v672_v33 = vsel %vm4889_vm14, %v668_v40, %v671_v1  ;;  %v3496_v61 = vcombine.low %v657_v60, %v662_v35  ;;  %v667_v5 = vsel %vm4889_vm14, %v663_v59, %v666_v0  ;;  %v673_v49 = vrot.slane %v671_v1, 4 }
 0x145   :  { %v676_v25 = vor.u32 %v675_v17, %v674_v51  ;;  %v3497_v58 = vcombine.low %v667_v5, %v672_v33  ;;  %v686_v50 = vor.u32 %v685_v44, %v682_v11 }
 0x147   :  { %v678_v22 = vrot.slane %v676_v25, 4  ;;  %v677_v42 = vsel %vm4889_vm14, %v673_v49, %v676_v25 }
 0x148   :  { %4033 = vmatmul.mubr.msk.bf16.gmra.mrb[8].mxu1 %vm709_vm6, %v3496_v61 }
 0x149   :  { %4036 = vmatprep.mubr.msk.bf16.mxu1 %vm709_vm6, %v3497_v58  ;;  %v687_v15 = vsel %vm4889_vm14, %v678_v22, %v686_v50 }
 0x14a   :  { %v3498_v63 = vcombine.low %v677_v42, %v687_v15 }
 0x150   :  { %4037 = vmatmul.mubr.msk.bf16.gmra.mrb[12].mxu1 %vm709_vm6, %v3498_v63 }
 0x20a   :  { %v4026_v56 = vpop.f32.mrb[0].mxu1 }
 0x20b   :  { %v1175_v46 = vadd.f32 %v4026_v56, %v3509_v38  ;;  %v1087_v32 = vpop.f32.mrb[1].mxu1 }
 0x20c   :  { %v1173_v43 = vadd.f32 %v3509_v38, %v1087_v32  ;;  %v4027_v13 = vpop.f32.mrb[2].mxu1 }
 0x20d   :  { %v1176_v16 = vadd.f32 %v4027_v13, %v3509_v38  ;;  %v1090_v14 = vpop.f32.mrb[3].mxu1  ;;  %v1191_v29 = vmax.f32 %v1175_v46, 0.0 }
 0x20e   :  { %v1174_v24 = vadd.f32 %v3509_v38, %v1090_v14  ;;  %v1189_v4 = vmax.f32 %v1173_v43, 0.0 }
 0x20f   :  { %v1192_v52 = vmax.f32 %v1176_v16, 0.0 }
 0x210   :  { %v1190_v39 = vmax.f32 %v1174_v24, 0.0 }
 0x211   :  { %v1206_v55 = vpack.c.bf16 %v1192_v52, %v1191_v29 }
 0x212   :  { %v1205_v0 = vpack.c.bf16 %v1190_v39, %v1189_v4  ;;  %v4360_v39 = vld [vmem:[#allocation3 + $0x30] sm:$0xff]  }
 0x213   :  { %v4030_v8 = vpop.f32.mrb[4].mxu1 }
 0x214   :  { %v1179_v2 = vadd.f32 %v4030_v8, %v3509_v38  ;;  %v1103_v6 = vpop.f32.mrb[5].mxu1  ;;  %4044 = vmatprep.mubr.msk.bf16.mxu0 %vm709_vm6, %v1205_v0  ;;  %v4998_v0 = vld [vmem:[%s5592_s6] ss:$0 sm:$0xff] }
 0x215   :  { %v1177_v54 = vadd.f32 %v3509_v38, %v1103_v6  ;;  %v4031_v27 = vpop.f32.mrb[6].mxu1  ;;  %4045 = vmatmul.mubr.msk.bf16.vlgmr.msra.gmra.mrb[16].mxu0 %vm709_vm6, %v1206_v55  ;;  %v4364_v55 = vld [vmem:[%s5591_s5 + $0x10] sm:$0xff]  }
 0x216   :  { %v1180_v21 = vadd.f32 %v4031_v27, %v3509_v38  ;;  %v1106_v40 = vpop.f32.mrb[7].mxu1  ;;  %4061 = vmatpush3.bf16.msra.mxu0 %v4358_v47  ;;  %v1195_v31 = vmax.f32 %v1179_v2, 0.0  ;;  %4120 = vmatprep.subr.bf16.mxu1 %v4364_v55 }
 0x217   :  { %v1178_v1 = vadd.f32 %v3509_v38, %v1106_v40  ;;  %4062 = vmatprep.subr.bf16.mxu0 %v4359_v34  ;;  %v1193_v36 = vmax.f32 %v1177_v54, 0.0  ;;  %4121 = vmatpush3.bf16.msra.mxu1 %v4364_v55 }
 0x218   :  { %v1196_v51 = vmax.f32 %v1180_v21, 0.0 }
 0x219   :  { %v1194_v17 = vmax.f32 %v1178_v1, 0.0 }
 0x21a   :  { %v1208_v37 = vpack.c.bf16 %v1196_v51, %v1195_v31  ;;  %4063 = vmatpush3.bf16.msra.mxu0 %v4359_v34 }
 0x21b   :  { %v1207_v9 = vpack.c.bf16 %v1194_v17, %v1193_v36  ;;  %v4034_v59 = vpop.f32.mrb[8].mxu1  ;;  %4080 = vmatprep.subr.bf16.mxu0 %v4360_v39 }
 0x21c   :  { %v1183_v35 = vadd.f32 %v4034_v59, %v3509_v38  ;;  %v1119_v33 = vpop.f32.mrb[9].mxu1 }
 0x21d   :  { %v1181_v60 = vadd.f32 %v3509_v38, %v1119_v33  ;;  %v4035_v25 = vpop.f32.mrb[10].mxu1  ;;  %4048 = vmatprep.mubr.msk.bf16.mxu0 %vm709_vm6, %v1207_v9 }
 0x21e   :  { %v1184_v11 = vadd.f32 %v4035_v25, %v3509_v38  ;;  %v1122_v44 = vpop.f32.mrb[11].mxu1  ;;  %4049 = vmatmul.mubr.msk.bf16.gmra.mrb[20].mxu0 %vm709_vm6, %v1208_v37  ;;  %v1199_v5 = vmax.f32 %v1183_v35, 0.0 }
 0x21f   :  { %v1182_v61 = vadd.f32 %v3509_v38, %v1122_v44  ;;  %v1197_v49 = vmax.f32 %v1181_v60, 0.0  ;;  %v4361_v44 = vld [vmem:[#allocation3 + $0x38] sm:$0xff]  }
 0x220   :  { %v1200_v58 = vmax.f32 %v1184_v11, 0.0 }
 0x221   :  { %v1198_v22 = vmax.f32 %v1182_v61, 0.0 }
 0x222   :  { %v1210_v50 = vpack.c.bf16 %v1200_v58, %v1199_v5 }
 0x223   :  { %v1209_v42 = vpack.c.bf16 %v1198_v22, %v1197_v49  ;;  %v4038_v15 = vpop.f32.mrb[12].mxu1 }
 0x224   :  { %v1187_v63 = vadd.f32 %v4038_v15, %v3509_v38  ;;  %v1135_v47 = vpop.f32.mrb[13].mxu1 }
 0x225   :  { %v1185_v56 = vadd.f32 %v3509_v38, %v1135_v47  ;;  %v4039_v46 = vpop.f32.mrb[14].mxu1  ;;  %4052 = vmatprep.mubr.msk.bf16.mxu0 %vm709_vm6, %v1209_v42 }
 0x226   :  { %v1188_v32 = vadd.f32 %v4039_v46, %v3509_v38  ;;  %v1138_v43 = vpop.f32.mrb[15].mxu1  ;;  %4053 = vmatmul.mubr.msk.bf16.gmra.mrb[24].mxu0 %vm709_vm6, %v1210_v50  ;;  %v1203_v16 = vmax.f32 %v1187_v63, 0.0 }
 0x227   :  { %v1186_v13 = vadd.f32 %v3509_v38, %v1138_v43  ;;  %v1201_v24 = vmax.f32 %v1185_v56, 0.0  ;;  %v4365_v38 = vld [vmem:[%s5591_s5 + $0x18] sm:$0xff]  }
 0x228   :  { %v1204_v14 = vmax.f32 %v1188_v32, 0.0  ;;  %4122 = vmatprep.subr.bf16.mxu1 %v4365_v38  ;;  %v5052_v43 = vld [vmem:[#allocation3 + $0x50] sm:$0xff]  }
 0x229   :  { %v1202_v29 = vmax.f32 %v1186_v13, 0.0  ;;  %4123 = vmatpush3.bf16.msra.mxu1 %v4365_v38 }
 0x22a   :  { %v1212_v52 = vpack.c.bf16 %v1204_v14, %v1203_v16 }
 0x22b   :  { %v1211_v4 = vpack.c.bf16 %v1202_v29, %v1201_v24 }
 0x22d   :  { %4056 = vmatprep.mubr.msk.bf16.mxu0 %vm709_vm6, %v1211_v4 }
 0x22e   :  { %4057 = vmatmul.mubr.msk.bf16.gmra.mrb[28].mxu0 %vm709_vm6, %v1212_v52 }
 0x2e8   :  { %v4046_v8 = vpop.f32.mrb[16].mxu0 }
 0x2e9   :  { %v1303_v2 = vadd.f32 %v4046_v8, %v4998_v0  ;;  %v1294_v6 = vpop.f32.mrb[17].mxu0 }
 0x2ea   :  { %v1295_v34 = vadd.f32 %v4998_v0, %v1294_v6  ;;  %v4047_v54 = vpop.f32.mrb[18].mxu0 }
 0x2eb   :  { %v5003_v27 = vadd.f32 %v1303_v2, %v4561_v18  ;;  %v1306_v21 = vadd.f32 %v4047_v54, %v4998_v0  ;;  %v1297_v40 = vpop.f32.mrb[19].mxu0 }
 0x2ec   :  { %v5007_v1 = vadd.f32 %v1295_v34, %v4564_v20  ;;  %v1298_v31 = vadd.f32 %v4998_v0, %v1297_v40 }
 0x2ed   :  { %v3730_v51 = vpack.c.bf16 %v5003_v27, %v5003_v27  ;;  %v5013_v36 = vadd.f32 %v1306_v21, %v4569_v23 }
 0x2ee   :  { %v3728_v17 = vpack.c.bf16 %v5007_v1, %v5007_v1  ;;  %v5018_v18 = vadd.f32 %v1298_v31, %v4574_v26 }
 0x2ef   :  { %v1426_v37 = vrot.slane %v3730_v51, 6  ;;  %v3731_v9 = vpack.c.bf16 %v5013_v36, %v5013_v36  ;;  %v1374_v60 = vpack.c.bf16 %v5013_v36, %v5003_v27 }
 0x2f0   :  { %v1421_v20 = vrot.slane %v3728_v17, 6  ;;  %v1373_v59 = vpack.c.bf16 %v5018_v18, %v5007_v1  ;;  %v3729_v35 = vpack.c.bf16 %v5018_v18, %v5018_v18 }
 0x2f1   :  { %v4050_v33 = vpop.f32.mrb[20].mxu0  ;;  %v1428_v23 = vrot.slane %v1426_v37, 4  ;;  %v1429_v25 = vrot.slane %v3731_v9, 6 }
 0x2f2   :  { %v1319_v26 = vadd.f32 %v4050_v33, %v4998_v0  ;;  %v1310_v11 = vpop.f32.mrb[21].mxu0  ;;  %v1422_v61 = vrot.slane %v1421_v20, 4  ;;  %1485 = vst.msk [vmem:[#allocation2] sm:$0xc] %vm51_vm2, %v1421_v20  ;;  %v1423_v5 = vrot.slane %v3729_v35, 6  ;;  %4064 = vmatprep.mubr.msk.bf16.mxu0 %vm709_vm6, %v1373_v59 }
 0x2f3   :  { %v1311_v58 = vadd.f32 %v4998_v0, %v1310_v11  ;;  %v4051_v49 = vpop.f32.mrb[22].mxu0  ;;  %v1430_v22 = vsel %vm4578_vm7, %v1428_v23, %v1429_v25  ;;  %4065 = vmatmul.mubr.msk.bf16.vlgmr.msra.gmra.mrb[32].mxu0 %vm709_vm6, %v1374_v60 }
 0x2f4   :  { %v5035_v50 = vadd.f32 %v1319_v26, %v4593_v41  ;;  %v1322_v42 = vadd.f32 %v4051_v49, %v4998_v0  ;;  %v1313_v15 = vpop.f32.mrb[23].mxu0  ;;  %1488 = vst.msk [vmem:[#allocation2 + $0xc] sm:$0xf] %vm360_vm8, %v1430_v22  ;;  %v1424_v63 = vsel %vm4578_vm7, %v1422_v61, %v1423_v5  ;;  %v1425_v47 = vrot.slane %v1423_v5, 4  ;;  %4081 = vmatpush3.bf16.msra.mxu0 %v4360_v39 }
 0x2f5   :  { %v5043_v56 = vadd.f32 %v1311_v58, %v4600_v45  ;;  %v1314_v46 = vadd.f32 %v4998_v0, %v1313_v15  ;;  %1486 = vst.msk [vmem:[#allocation2 + $0x4] sm:$0xf] %vm360_vm8, %v1424_v63  ;;  %4082 = vmatprep.subr.bf16.mxu0 %v4361_v44 }
 0x2f6   :  { %v3734_v41 = vpack.c.bf16 %v5035_v50, %v5035_v50  ;;  %v5050_v32 = vadd.f32 %v1322_v42, %v4606_v48  ;;  %v1427_v13 = vsel %vm4578_vm7, %v1425_v47, %v1426_v37  ;;  %v1431_v48 = vrot.slane %v1429_v25, 4 }
 0x2f7   :  { %v3732_v45 = vpack.c.bf16 %v5043_v56, %v5043_v56  ;;  %v5059_v16 = vadd.f32 %v1314_v46, %v4615_v53  ;;  %1487 = vst.msk [vmem:[#allocation2 + $0x8] sm:$0xf] %vm360_vm8, %v1427_v13 }
 0x2f8   :  { %v1438_v14 = vrot.slane %v3734_v41, 6  ;;  %v3735_v24 = vpack.c.bf16 %v5050_v32, %v5050_v32  ;;  %4083 = vmatpush3.bf16.msra.mxu0 %v4361_v44  ;;  %v1376_v53 = vpack.c.bf16 %v5050_v32, %v5035_v50 }
 0x2f9   :  { %v1432_v29 = vrot.slane %v3732_v45, 6  ;;  %v1375_v52 = vpack.c.bf16 %v5059_v16, %v5043_v56  ;;  %v3733_v4 = vpack.c.bf16 %v5059_v16, %v5059_v16  ;;  %v4054_v39 = vpop.f32.mrb[24].mxu0  ;;  %4100 = vmatprep.subr.bf16.mxu0 %v5052_v43  ;;  %v1503_v25 = vld [vmem:[#allocation2] sm:$0xe] }
 0x2fa   :  { %v1440_v55 = vrot.slane %v1438_v14, 4  ;;  %v1441_v38 = vrot.slane %v3735_v24, 6  ;;  %v1335_v8 = vadd.f32 %v4054_v39, %v4998_v0  ;;  %v1326_v2 = vpop.f32.mrb[25].mxu0  ;;  %v3537_v42 = vrot.slane %v1503_v25, 9 }
 0x2fb   :  { %v1433_v6 = vsel %vm4578_vm7, %v1431_v48, %v1432_v29  ;;  %v1434_v34 = vrot.slane %v1432_v29, 4  ;;  %v1435_v54 = vrot.slane %v3733_v4, 6  ;;  %v1327_v21 = vadd.f32 %v4998_v0, %v1326_v2  ;;  %v4055_v40 = vpop.f32.mrb[26].mxu0  ;;  %4068 = vmatprep.mubr.msk.bf16.mxu0 %vm709_vm6, %v1375_v52  ;;  %v5123_v29 = vld [vmem:[#allocation2 + $0xc] sm:$0xf] }
 0x2fc   :  { %1489 = vst.msk [vmem:[#allocation2 + $0x10] sm:$0xf] %vm360_vm8, %v1433_v6  ;;  %v1442_v31 = vsel %vm4578_vm7, %v1440_v55, %v1441_v38  ;;  %v1443_v51 = vrot.slane %v1441_v38, 4  ;;  %v5080_v17 = vadd.f32 %v1335_v8, %v4634_v7  ;;  %v1338_v37 = vadd.f32 %v4055_v40, %v4998_v0  ;;  %v1329_v9 = vpop.f32.mrb[27].mxu0  ;;  %4069 = vmatmul.mubr.msk.bf16.gmra.mrb[36].mxu0 %vm709_vm6, %v1376_v53  ;;  %v5091_v23 = vld [vmem:[#allocation2 + $0x4] sm:$0xf] }
 0x2fd   :  { %1492 = vst.msk [vmem:[#allocation2 + $0x1c] sm:$0xf] %vm360_vm8, %v1442_v31  ;;  %v1436_v20 = vsel %vm4578_vm7, %v1434_v34, %v1435_v54  ;;  %v1437_v59 = vrot.slane %v1435_v54, 4  ;;  %v5088_v35 = vadd.f32 %v1327_v21, %v4641_v12  ;;  %v1330_v33 = vadd.f32 %v4998_v0, %v1329_v9 }
 0x2fe   :  { %1493 = vst.msk [vmem:[#allocation2 + $0x20] sm:$0x3] %vm48_vm3, %v1443_v51  ;;  %v3738_v7 = vpack.c.bf16 %v5080_v17, %v5080_v17  ;;  %v5098_v60 = vadd.f32 %v1338_v37, %v4650_v19  ;;  %v1544_v44 = vrot.slane %v5091_v23, 5  ;;  %v1550_v21 = vrot.slane %v5123_v29, 5 }
 0x2ff   :  { %1490 = vst.msk [vmem:[#allocation2 + $0x14] sm:$0xf] %vm360_vm8, %v1436_v20  ;;  %v1439_v26 = vsel %vm4578_vm7, %v1437_v59, %v1438_v14  ;;  %v3736_v12 = vpack.c.bf16 %v5088_v35, %v5088_v35  ;;  %v5105_v11 = vadd.f32 %v1330_v33, %v4658_v28  ;;  %v5115_v28 = vld [vmem:[#allocation2 + $0x8] sm:$0xf] }
 0x300   :  { %1491 = vst.msk [vmem:[#allocation2 + $0x18] sm:$0xf] %vm360_vm8, %v1439_v26  ;;  %v1449_v61 = vrot.slane %v3738_v7, 6  ;;  %v3739_v5 = vpack.c.bf16 %v5098_v60, %v5098_v60  ;;  %v1378_v63 = vpack.c.bf16 %v5098_v60, %v5080_v17  ;;  %v1546_v48 = vrot.slane %v1544_v44, 4 }
 0x301   :  { %v1444_v19 = vrot.slane %v3736_v12, 6  ;;  %v1377_v58 = vpack.c.bf16 %v5105_v11, %v5088_v35  ;;  %v3737_v49 = vpack.c.bf16 %v5105_v11, %v5105_v11  ;;  %v4058_v22 = vpop.f32.mrb[28].mxu0  ;;  %v1547_v38 = vrot.slane %v5115_v28, 5 }
 0x302   :  { %v1451_v15 = vrot.slane %v1449_v61, 4  ;;  %v1452_v47 = vrot.slane %v3739_v5, 6  ;;  %v1351_v46 = vadd.f32 %v4058_v22, %v4998_v0  ;;  %v1342_v41 = vpop.f32.mrb[29].mxu0 }
 0x303   :  { %v1445_v13 = vrot.slane %v1444_v19, 4  ;;  %1494 = vst.msk [vmem:[#allocation2 + $0x24] sm:$0xc] %vm51_vm2, %v1444_v19  ;;  %v1446_v45 = vrot.slane %v3737_v49, 6  ;;  %v1343_v14 = vadd.f32 %v4998_v0, %v1342_v41  ;;  %v4059_v24 = vpop.f32.mrb[30].mxu0  ;;  %4072 = vmatprep.mubr.msk.bf16.mxu0 %vm709_vm6, %v1377_v58  ;;  %v1548_v59 = vsel %vm5134_vm1, %v1546_v48, %v1547_v38 }
 0x304   :  { %v1453_v52 = vsel %vm4578_vm7, %v1451_v15, %v1452_v47  ;;  %v5128_v4 = vadd.f32 %v1351_v46, %v4689_v57  ;;  %v1354_v39 = vadd.f32 %v4059_v24, %v4998_v0  ;;  %v1345_v55 = vpop.f32.mrb[31].mxu0  ;;  %4073 = vmatmul.mubr.msk.bf16.gmra.mrb[40].mxu0 %vm709_vm6, %v1378_v63  ;;  %v5162_v51 = vld [vmem:[#allocation2 + $0x10] sm:$0xf]  ;;  %v1552_v63 = vrot.slane %v1550_v21, 4  ;;  %v5197_v48 = vld [vmem:[#allocation2 + $0x1c] sm:$0xf] }
 0x305   :  { %1497 = vst.msk [vmem:[#allocation2 + $0x30] sm:$0xf] %vm360_vm8, %v1453_v52  ;;  %v1447_v8 = vsel %vm4578_vm7, %v1445_v13, %v1446_v45  ;;  %v1448_v57 = vrot.slane %v1446_v45, 4  ;;  %v5143_v2 = vadd.f32 %v1343_v14, %v4696_v62  ;;  %v1346_v6 = vadd.f32 %v4998_v0, %v1345_v55 }
 0x306   :  { %1495 = vst.msk [vmem:[#allocation2 + $0x28] sm:$0xf] %vm360_vm8, %v1447_v8  ;;  %v3742_v34 = vpack.c.bf16 %v5128_v4, %v5128_v4  ;;  %v5150_v54 = vadd.f32 %v1354_v39, %v4706_v3  ;;  %v1545_v0 = vsel %vm5134_vm1, %v3537_v42, %v1544_v44  ;;  %v5164_v37 = vld [vmem:[#allocation2 + $0x14] sm:$0xf]  ;;  %v1454_v3 = vrot.slane %v1452_v47, 4 }
 0x307   :  { %v1450_v40 = vsel %vm4578_vm7, %v1448_v57, %v1449_v61  ;;  %v3740_v31 = vpack.c.bf16 %v5143_v2, %v5143_v2  ;;  %v5158_v62 = vadd.f32 %v1346_v6, %v4715_v10  ;;  %v5177_v26 = vld [vmem:[#allocation2 + $0x18] sm:$0xf]  ;;  %v1553_v61 = vrot.slane %v5162_v51, 5 }
 0x308   :  { %1496 = vst.msk [vmem:[#allocation2 + $0x2c] sm:$0xf] %vm360_vm8, %v1450_v40  ;;  %v1461_v9 = vrot.slane %v3742_v34, 6  ;;  %v3743_v20 = vpack.c.bf16 %v5150_v54, %v5150_v54  ;;  %v1380_v10 = vpack.c.bf16 %v5150_v54, %v5128_v4  ;;  %v1556_v5 = vrot.slane %v5164_v37, 5 }
 0x309   :  { %v1455_v33 = vrot.slane %v3740_v31, 6  ;;  %v1379_v7 = vpack.c.bf16 %v5158_v62, %v5143_v2  ;;  %v3741_v25 = vpack.c.bf16 %v5158_v62, %v5158_v62  ;;  %v3551_v22 = vcombine.low %v1545_v0, %v1548_v59  ;;  %v1511_v31 = vld [vmem:[#allocation2 + $0x20] sm:$0x1] }
 0x30a   :  { %v1463_v12 = vrot.slane %v1461_v9, 4  ;;  %v1464_v44 = vrot.slane %v3743_v20, 6  ;;  %v1559_v47 = vrot.slane %v5177_v26, 5  ;;  %v1549_v13 = vrot.slane %v1547_v38, 4  ;;  %v4363_v0 = vld [vmem:[#allocation3 + $0x58] sm:$0xff]  }
 0x30b   :  { %v1456_v19 = vsel %vm4578_vm7, %v1454_v3, %v1455_v33  ;;  %v1457_v58 = vrot.slane %v1455_v33, 4  ;;  %v1458_v49 = vrot.slane %v3741_v25, 6  ;;  %4076 = vmatprep.mubr.msk.bf16.mxu0 %vm709_vm6, %v1379_v7  ;;  %v1558_v45 = vrot.slane %v1556_v5, 4 }
 0x30c   :  { %1498 = vst.msk [vmem:[#allocation2 + $0x34] sm:$0xf] %vm360_vm8, %v1456_v19  ;;  %v1465_v42 = vsel %vm4578_vm7, %v1463_v12, %v1464_v44  ;;  %v1466_v15 = vrot.slane %v1464_v44, 4  ;;  %4077 = vmatmul.mubr.msk.bf16.gmra.mrb[44].mxu0 %vm709_vm6, %v1380_v10  ;;  %v1555_v24 = vrot.slane %v1553_v61, 4  ;;  %v1554_v39 = vsel %vm5134_vm1, %v1552_v63, %v1553_v61  ;;  %v1512_v10 = vld [vmem:[#allocation2 + $0x24] sm:$0xe] }
 0x30d   :  { %1501 = vst.msk [vmem:[#allocation2 + $0x40] sm:$0xf] %vm360_vm8, %v1465_v42  ;;  %v1459_v46 = vsel %vm4578_vm7, %v1457_v58, %v1458_v49  ;;  %v1460_v41 = vrot.slane %v1458_v49, 4  ;;  %4084 = vmatprep.mubr.msk.bf16.mxu0 %vm709_vm6, %v3551_v22  ;;  %v5193_v14 = vld [vmem:[#allocation2 + $0x28] sm:$0xf]  ;;  %v1560_v55 = vsel %vm5134_vm1, %v1558_v45, %v1559_v47  ;;  %v1551_v8 = vsel %vm5134_vm1, %v1549_v13, %v1550_v21 }
 0x30e   :  { %1502 = vst.msk [vmem:[#allocation2 + $0x44] sm:$0x3] %vm48_vm3, %v1466_v15  ;;  %v1569_v38 = vrot.slane %v5193_v14, 5  ;;  %v1562_v57 = vrot.slane %v5197_v48, 5  ;;  %v3552_v34 = vcombine.low %v1551_v8, %v1554_v39  ;;  %v1557_v40 = vsel %vm5134_vm1, %v1555_v24, %v1556_v5  ;;  %v5220_v25 = vld [vmem:[#allocation2 + $0x30] sm:$0xf] }
 0x30f   :  { %1499 = vst.msk [vmem:[#allocation2 + $0x38] sm:$0xf] %vm360_vm8, %v1459_v46  ;;  %v1462_v52 = vsel %vm4578_vm7, %v1460_v41, %v1461_v9  ;;  %v5210_v6 = vld [vmem:[#allocation2 + $0x2c] sm:$0xf]  ;;  %v3553_v3 = vcombine.low %v1557_v40, %v1560_v55  ;;  %v1561_v9 = vrot.slane %v1559_v47, 4  ;;  %v1565_v33 = vrot.slane %v1511_v31, 5 }
 0x310   :  { %1500 = vst.msk [vmem:[#allocation2 + $0x3c] sm:$0xf] %vm360_vm8, %v1462_v52  ;;  %v1571_v20 = vrot.slane %v1569_v38, 4  ;;  %v1572_v59 = vrot.slane %v5210_v6, 5  ;;  %v1564_v21 = vrot.slane %v1562_v57, 4  ;;  %v3538_v61 = vrot.slane %v1512_v10, 9 }
 0x311   :  { %v1563_v12 = vsel %vm5134_vm1, %v1561_v9, %v1562_v57  ;;  %v1575_v58 = vrot.slane %v5220_v25, 5  ;;  %v1605_v55 = vrot.slane %v5091_v23, 7  ;;  %v1608_v9 = vrot.slane %v5115_v28, 7 }
 0x312   :  { %v1573_v5 = vsel %vm5134_vm1, %v1571_v20, %v1572_v59  ;;  %v1566_v19 = vsel %vm5134_vm1, %v1564_v21, %v1565_v33  ;;  %v1570_v42 = vsel %vm5134_vm1, %v3538_v61, %v1569_v38  ;;  %v1574_v41 = vrot.slane %v1572_v59, 4  ;;  %v1592_v59 = vld [vmem:[#allocation2] sm:$0x8] }
 0x313   :  { %v5224_v44 = vld [vmem:[#allocation2 + $0x34] sm:$0xf]  ;;  %v3554_v22 = vcombine.low %v1563_v12, %v1566_v19  ;;  %v3555_v63 = vcombine.low %v1570_v42, %v1573_v5  ;;  %v1577_v13 = vrot.slane %v1575_v58, 4  ;;  %v3539_v10 = vrot.slane %v1592_v59, 11 }
 0x314   :  { %4085 = vmatmul.mubr.msk.bf16.vlgmr.msra.gmra.mrb[32].mxu0 %vm709_vm6, %v3552_v34  ;;  %v1578_v15 = vrot.slane %v5224_v44, 5  ;;  %v5240_v24 = vld [vmem:[#allocation2 + $0x40] sm:$0xf]  ;;  %v1576_v38 = vsel %vm5134_vm1, %v1574_v41, %v1575_v58  ;;  %v1617_v61 = vrot.slane %v5164_v37, 7  ;;  %v1611_v5 = vrot.slane %v5123_v29, 7 }
 0x315   :  { %4101 = vmatpush3.bf16.msra.mxu0 %v5052_v43  ;;  %4088 = vmatprep.mubr.msk.bf16.mxu0 %vm709_vm6, %v3553_v3  ;;  %v1587_v8 = vrot.slane %v5240_v24, 5  ;;  %v1520_v40 = vld [vmem:[#allocation2 + $0x44] sm:$0x1]  ;;  %v1607_v3 = vrot.slane %v1605_v55, 4  ;;  %v1606_v19 = vsel %vm5257_vm9, %v3539_v10, %v1605_v55  ;;  %v1614_v58 = vrot.slane %v5162_v51, 7 }
 0x316   :  { %v5218_v7 = vld [vmem:[#allocation2 + $0x38] sm:$0xf]  ;;  %4102 = vmatprep.subr.bf16.mxu0 %v4363_v0  ;;  %v1580_v45 = vrot.slane %v1578_v15, 4  ;;  %v1579_v52 = vsel %vm5134_vm1, %v1577_v13, %v1578_v15  ;;  %v1590_v20 = vrot.slane %v1520_v40, 5  ;;  %v1619_v42 = vrot.slane %v1617_v61, 4 }
 0x317   :  { %v1581_v43 = vrot.slane %v5218_v7, 5  ;;  %v5232_v49 = vld [vmem:[#allocation2 + $0x3c] sm:$0xf]  ;;  %v3556_v57 = vcombine.low %v1576_v38, %v1579_v52  ;;  %v1589_v23 = vrot.slane %v1587_v8, 4  ;;  %v1609_v12 = vsel %vm5257_vm9, %v1607_v3, %v1608_v9 }
 0x318   :  { %v1584_v46 = vrot.slane %v5232_v49, 5  ;;  %v1620_v15 = vrot.slane %v5177_v26, 7  ;;  %v1613_v37 = vrot.slane %v1611_v5, 4  ;;  %v1616_v53 = vrot.slane %v1614_v58, 4 }
 0x319   :  { %4103 = vmatpush3.bf16.msra.mxu0 %v4363_v0  ;;  %v1583_v47 = vrot.slane %v1581_v43, 4  ;;  %v1582_v34 = vsel %vm5134_vm1, %v1580_v45, %v1581_v43  ;;  %v1591_v28 = vsel %vm5134_vm1, %v1589_v23, %v1590_v20  ;;  %v1623_v41 = vrot.slane %v5197_v48, 7  ;;  %v1593_v45 = vld [vmem:[#allocation2 + $0x20] sm:$0x7] }
 0x31a   :  { %v1586_v0 = vrot.slane %v1584_v46, 4  ;;  %v1615_v29 = vsel %vm5257_vm9, %v1613_v37, %v1614_v58  ;;  %v1618_v26 = vsel %vm5257_vm9, %v1616_v53, %v1617_v61  ;;  %v1633_v38 = vrot.slane %v5210_v6, 7  ;;  %v4366_v37 = vld [vmem:[#allocation3 + $0x70] sm:$0xff]   ;;  %v3588_v53 = vld [vmem:[%s5590_s4 + $0x1] ss:$0 sm:$0xff] }
 0x31b   :  { %v1585_v39 = vsel %vm5134_vm1, %v1583_v47, %v1584_v46  ;;  %v1621_v47 = vsel %vm5257_vm9, %v1619_v42, %v1620_v15  ;;  %v1630_v46 = vrot.slane %v5193_v14, 7  ;;  %v1625_v14 = vrot.slane %v1623_v41, 4  ;;  %4140 = vmatprep.subr.bf16.mxu1 %v4366_v37 }
 0x31c   :  { %4089 = vmatmul.mubr.msk.bf16.gmra.mrb[36].mxu0 %vm709_vm6, %v3554_v22  ;;  %v3557_v31 = vcombine.low %v1582_v34, %v1585_v39  ;;  %v1588_v21 = vsel %vm5134_vm1, %v1586_v0, %v1587_v8  ;;  %v3569_v22 = vcombine.low %v1606_v19, %v1609_v12  ;;  %v3571_v52 = vcombine.low %v1618_v26, %v1621_v47 }
 0x31d   :  { %4092 = vmatprep.mubr.msk.bf16.mxu0 %vm709_vm6, %v3555_v63  ;;  %v3558_v43 = vcombine.low %v1588_v21, %v1591_v28  ;;  %v1610_v63 = vrot.slane %v1608_v9, 4  ;;  %v1622_v39 = vrot.slane %v1620_v15, 4  ;;  %v1632_v55 = vrot.slane %v1630_v46, 4 }
 0x31e   :  { %v1626_v8 = vrot.slane %v1593_v45, 7  ;;  %v1636_v3 = vrot.slane %v5220_v25, 7  ;;  %v1639_v23 = vrot.slane %v5224_v44, 7  ;;  %v1645_v21 = vrot.slane %v5232_v49, 7 }
 0x31f   :  { %v1612_v51 = vsel %vm5257_vm9, %v1610_v63, %v1611_v5  ;;  %v1624_v48 = vsel %vm5257_vm9, %v1622_v39, %v1623_v41  ;;  %v1634_v40 = vsel %vm5257_vm9, %v1632_v55, %v1633_v38  ;;  %v1648_v28 = vrot.slane %v5240_v24, 7 }
 0x320   :  { %v3570_v13 = vcombine.low %v1612_v51, %v1615_v29  ;;  %v1627_v0 = vsel %vm5257_vm9, %v1625_v14, %v1626_v8  ;;  %v1638_v10 = vrot.slane %v1636_v3, 4  ;;  %v1641_v12 = vrot.slane %v1639_v23, 4 }
 0x321   :  { %v3572_v6 = vcombine.low %v1624_v48, %v1627_v0  ;;  %v1647_v58 = vrot.slane %v1645_v21, 4 }
 0x322   :  { %v1640_v25 = vsel %vm5257_vm9, %v1638_v10, %v1639_v23 }
 0x323   :  { %v1649_v15 = vsel %vm5257_vm9, %v1647_v58, %v1648_v28 }
 0x324   :  { %4093 = vmatmul.mubr.msk.bf16.gmra.mrb[40].mxu0 %vm709_vm6, %v3556_v57  ;;  %v1594_v57 = vld [vmem:[#allocation2 + $0x24] sm:$0x8] }
 0x325   :  { %4096 = vmatprep.mubr.msk.bf16.mxu0 %vm709_vm6, %v3557_v31  ;;  %v3540_v34 = vrot.slane %v1594_v57, 11  ;;  %v1642_v31 = vrot.slane %v5218_v7, 7  ;;  %v1635_v7 = vrot.slane %v1633_v38, 4 }
 0x327   :  { %v1631_v9 = vsel %vm5257_vm9, %v3540_v34, %v1630_v46  ;;  %v1644_v59 = vrot.slane %v1642_v31, 4  ;;  %v1637_v44 = vsel %vm5257_vm9, %v1635_v7, %v1636_v3  ;;  %v1643_v49 = vsel %vm5257_vm9, %v1641_v12, %v1642_v31  ;;  %v4367_v34 = vld [vmem:[#allocation3 + $0x78] sm:$0xff]  }
 0x328   :  { %v3573_v20 = vcombine.low %v1631_v9, %v1634_v40  ;;  %v3574_v5 = vcombine.low %v1637_v44, %v1640_v25 }
 0x329   :  { %v1646_v61 = vsel %vm5257_vm9, %v1644_v59, %v1645_v21 }
 0x32a   :  { %v3575_v19 = vcombine.low %v1643_v49, %v1646_v61 }
 0x32c   :  { %4097 = vmatmul.mubr.msk.bf16.gmra.mrb[44].mxu0 %vm709_vm6, %v3558_v43  ;;  %v1595_v43 = vld [vmem:[#allocation2 + $0x44] sm:$0x7] }
 0x32d   :  { %4104 = vmatprep.mubr.msk.bf16.mxu0 %vm709_vm6, %v3569_v22  ;;  %v1650_v22 = vrot.slane %v1648_v28, 4  ;;  %v1651_v42 = vrot.slane %v1595_v43, 7 }
 0x32f   :  { %v1652_v63 = vsel %vm5257_vm9, %v1650_v22, %v1651_v42 }
 0x330   :  { %v3576_v24 = vcombine.low %v1649_v15, %v1652_v63 }
 0x334   :  { %4105 = vmatmul.mubr.msk.bf16.vlgmr.msra.gmra.mrb[32].mxu0 %vm709_vm6, %v3570_v13 }
 0x335   :  { %4108 = vmatprep.mubr.msk.bf16.mxu0 %vm709_vm6, %v3571_v52 }
 0x33c   :  { %4109 = vmatmul.mubr.msk.bf16.gmra.mrb[36].mxu0 %vm709_vm6, %v3572_v6 }
 0x33d   :  { %4112 = vmatprep.mubr.msk.bf16.mxu0 %vm709_vm6, %v3573_v20 }
 0x344   :  { %4113 = vmatmul.mubr.msk.bf16.gmra.mrb[40].mxu0 %vm709_vm6, %v3574_v5 }
 0x345   :  { %4116 = vmatprep.mubr.msk.bf16.mxu0 %vm709_vm6, %v3575_v19 }
 0x34c   :  { %4117 = vmatmul.mubr.msk.bf16.gmra.mrb[44].mxu0 %vm709_vm6, %v3576_v24 }
 0x407   :  { %v4106_v29 = vpop.f32.mrb[32].mxu0 }
 0x408   :  { %v2141_v47 = vadd.f32 %v4106_v29, %v3588_v53  ;;  %v2052_v46 = vpop.f32.mrb[33].mxu0 }
 0x409   :  { %v2139_v51 = vadd.f32 %v3588_v53, %v2052_v46  ;;  %v4107_v41 = vpop.f32.mrb[34].mxu0 }
 0x40a   :  { %v2142_v13 = vadd.f32 %v4107_v41, %v3588_v53  ;;  %v2055_v26 = vpop.f32.mrb[35].mxu0  ;;  %v2157_v52 = vmax.f32 %v2141_v47, 0.0 }
 0x40b   :  { %v2140_v45 = vadd.f32 %v3588_v53, %v2055_v26  ;;  %v2155_v39 = vmax.f32 %v2139_v51, 0.0 }
 0x40c   :  { %v2158_v33 = vmax.f32 %v2142_v13, 0.0 }
 0x40d   :  { %v2156_v55 = vmax.f32 %v2140_v45, 0.0 }
 0x40e   :  { %v2172_v38 = vpack.c.bf16 %v2158_v33, %v2157_v52 }
 0x40f   :  { %v2171_v14 = vpack.c.bf16 %v2156_v55, %v2155_v39  ;;  %v4110_v8 = vpop.f32.mrb[36].mxu0  ;;  %v4368_v55 = vld [vmem:[#allocation3 + $0x60] sm:$0xff]  }
 0x410   :  { %v2145_v57 = vadd.f32 %v4110_v8, %v3588_v53  ;;  %v2068_v48 = vpop.f32.mrb[37].mxu0 }
 0x411   :  { %v2143_v40 = vadd.f32 %v3588_v53, %v2068_v48  ;;  %v4111_v31 = vpop.f32.mrb[38].mxu0  ;;  %4124 = vmatprep.mubr.msk.bf16.mxu1 %vm709_vm6, %v2171_v14  ;;  %v5336_v14 = vld [vmem:[%s5592_s6 + $0x1] ss:$0 sm:$0xff] }
 0x412   :  { %v2146_v0 = vadd.f32 %v4111_v31, %v3588_v53  ;;  %v2071_v3 = vpop.f32.mrb[39].mxu0  ;;  %4125 = vmatmul.mubr.msk.bf16.vlgmr.msra.gmra.mrb[16].mxu1 %vm709_vm6, %v2172_v38  ;;  %v2161_v9 = vmax.f32 %v2145_v57, 0.0  ;;  %v4388_v38 = vld [vmem:[%s5591_s5 + $0x20] sm:$0xff]  }
 0x413   :  { %v2144_v6 = vadd.f32 %v3588_v53, %v2071_v3  ;;  %4141 = vmatpush3.bf16.msra.mxu1 %v4366_v37  ;;  %v2159_v20 = vmax.f32 %v2143_v40, 0.0  ;;  %4200 = vmatprep.subr.bf16.mxu0 %v4388_v38 }
 0x414   :  { %v2162_v23 = vmax.f32 %v2146_v0, 0.0  ;;  %4142 = vmatprep.subr.bf16.mxu1 %v4367_v34  ;;  %4201 = vmatpush3.bf16.msra.mxu0 %v4388_v38 }
 0x415   :  { %v2160_v59 = vmax.f32 %v2144_v6, 0.0 }
 0x416   :  { %v2174_v21 = vpack.c.bf16 %v2162_v23, %v2161_v9 }
 0x417   :  { %v2173_v7 = vpack.c.bf16 %v2160_v59, %v2159_v20  ;;  %v4114_v10 = vpop.f32.mrb[40].mxu0  ;;  %4143 = vmatpush3.bf16.msra.mxu1 %v4367_v34 }
 0x418   :  { %v2149_v12 = vadd.f32 %v4114_v10, %v3588_v53  ;;  %v2084_v25 = vpop.f32.mrb[41].mxu0  ;;  %4160 = vmatprep.subr.bf16.mxu1 %v4368_v55 }
 0x419   :  { %v2147_v61 = vadd.f32 %v3588_v53, %v2084_v25  ;;  %v4115_v44 = vpop.f32.mrb[42].mxu0  ;;  %4128 = vmatprep.mubr.msk.bf16.mxu1 %vm709_vm6, %v2173_v7 }
 0x41a   :  { %v2150_v28 = vadd.f32 %v4115_v44, %v3588_v53  ;;  %v2087_v5 = vpop.f32.mrb[43].mxu0  ;;  %4129 = vmatmul.mubr.msk.bf16.gmra.mrb[20].mxu1 %vm709_vm6, %v2174_v21  ;;  %v2165_v43 = vmax.f32 %v2149_v12, 0.0 }
 0x41b   :  { %v2148_v49 = vadd.f32 %v3588_v53, %v2087_v5  ;;  %v2163_v58 = vmax.f32 %v2147_v61, 0.0  ;;  %v4369_v5 = vld [vmem:[#allocation3 + $0x68] sm:$0xff]  }
 0x41c   :  { %v2166_v19 = vmax.f32 %v2150_v28, 0.0 }
 0x41d   :  { %v2164_v22 = vmax.f32 %v2148_v49, 0.0 }
 0x41e   :  { %v2176_v42 = vpack.c.bf16 %v2166_v19, %v2165_v43 }
 0x41f   :  { %v2175_v15 = vpack.c.bf16 %v2164_v22, %v2163_v58  ;;  %v4118_v63 = vpop.f32.mrb[44].mxu0 }
 0x420   :  { %v2153_v24 = vadd.f32 %v4118_v63, %v3588_v53  ;;  %v2100_v37 = vpop.f32.mrb[45].mxu0 }
 0x421   :  { %v2151_v29 = vadd.f32 %v3588_v53, %v2100_v37  ;;  %v4119_v47 = vpop.f32.mrb[46].mxu0  ;;  %4132 = vmatprep.mubr.msk.bf16.mxu1 %vm709_vm6, %v2175_v15 }
 0x422   :  { %v2154_v46 = vadd.f32 %v4119_v47, %v3588_v53  ;;  %v2103_v51 = vpop.f32.mrb[47].mxu0  ;;  %4133 = vmatmul.mubr.msk.bf16.gmra.mrb[24].mxu1 %vm709_vm6, %v2176_v42  ;;  %v2169_v13 = vmax.f32 %v2153_v24, 0.0 }
 0x423   :  { %v2152_v41 = vadd.f32 %v3588_v53, %v2103_v51  ;;  %v2167_v45 = vmax.f32 %v2151_v29, 0.0  ;;  %v4389_v53 = vld [vmem:[%s5591_s5 + $0x28] sm:$0xff]  }
 0x424   :  { %v2170_v26 = vmax.f32 %v2154_v46, 0.0  ;;  %4202 = vmatprep.subr.bf16.mxu0 %v4389_v53  ;;  %v5390_v51 = vld [vmem:[#allocation3 + $0x80] sm:$0xff]  }
 0x425   :  { %v2168_v52 = vmax.f32 %v2152_v41, 0.0  ;;  %4203 = vmatpush3.bf16.msra.mxu0 %v4389_v53 }
 0x426   :  { %v2178_v33 = vpack.c.bf16 %v2170_v26, %v2169_v13 }
 0x427   :  { %v2177_v39 = vpack.c.bf16 %v2168_v52, %v2167_v45 }
 0x429   :  { %4136 = vmatprep.mubr.msk.bf16.mxu1 %vm709_vm6, %v2177_v39 }
 0x42a   :  { %4137 = vmatmul.mubr.msk.bf16.gmra.mrb[28].mxu1 %vm709_vm6, %v2178_v33 }
 0x4e5   :  { %v4126_v8 = vpop.f32.mrb[16].mxu1 }
 0x4e6   :  { %v2271_v57 = vadd.f32 %v4126_v8, %v5336_v14  ;;  %v2262_v48 = vpop.f32.mrb[17].mxu1 }
 0x4e7   :  { %v2263_v34 = vadd.f32 %v5336_v14, %v2262_v48  ;;  %v4127_v40 = vpop.f32.mrb[18].mxu1 }
 0x4e8   :  { %v5341_v31 = vadd.f32 %v2271_v57, %v5003_v27  ;;  %v2274_v0 = vadd.f32 %v4127_v40, %v5336_v14  ;;  %v2265_v3 = vpop.f32.mrb[19].mxu1 }
 0x4e9   :  { %v5345_v6 = vadd.f32 %v2263_v34, %v5007_v1  ;;  %v2266_v9 = vadd.f32 %v5336_v14, %v2265_v3 }
 0x4ea   :  { %v3746_v23 = vpack.c.bf16 %v5341_v31, %v5341_v31  ;;  %v5351_v20 = vadd.f32 %v2274_v0, %v5013_v36 }
 0x4eb   :  { %v3744_v59 = vpack.c.bf16 %v5345_v6, %v5345_v6  ;;  %v5356_v27 = vadd.f32 %v2266_v9, %v5018_v18 }
 0x4ec   :  { %v2394_v21 = vrot.slane %v3746_v23, 6  ;;  %v3747_v7 = vpack.c.bf16 %v5351_v20, %v5351_v20  ;;  %v2342_v61 = vpack.c.bf16 %v5351_v20, %v5341_v31 }
 0x4ed   :  { %v2389_v1 = vrot.slane %v3744_v59, 6  ;;  %v2341_v10 = vpack.c.bf16 %v5356_v27, %v5345_v6  ;;  %v3745_v12 = vpack.c.bf16 %v5356_v27, %v5356_v27  ;;  %v4130_v25 = vpop.f32.mrb[20].mxu1 }
 0x4ee   :  { %v2396_v36 = vrot.slane %v2394_v21, 4  ;;  %v2397_v44 = vrot.slane %v3747_v7, 6  ;;  %v2287_v18 = vadd.f32 %v4130_v25, %v5336_v14  ;;  %v2278_v28 = vpop.f32.mrb[21].mxu1 }
 0x4ef   :  { %v2390_v49 = vrot.slane %v2389_v1, 4  ;;  %2453 = vst.msk [vmem:[#allocation2] sm:$0xc] %vm51_vm2, %v2389_v1  ;;  %v2391_v43 = vrot.slane %v3745_v12, 6  ;;  %v2279_v19 = vadd.f32 %v5336_v14, %v2278_v28  ;;  %v4131_v58 = vpop.f32.mrb[22].mxu1  ;;  %4144 = vmatprep.mubr.msk.bf16.mxu1 %vm709_vm6, %v2341_v10 }
 0x4f0   :  { %v2398_v22 = vsel %vm4578_vm7, %v2396_v36, %v2397_v44  ;;  %v5373_v42 = vadd.f32 %v2287_v18, %v5035_v50  ;;  %v2290_v15 = vadd.f32 %v4131_v58, %v5336_v14  ;;  %v2281_v63 = vpop.f32.mrb[23].mxu1  ;;  %4145 = vmatmul.mubr.msk.bf16.vlgmr.msra.gmra.mrb[32].mxu1 %vm709_vm6, %v2342_v61 }
 0x4f1   :  { %2456 = vst.msk [vmem:[#allocation2 + $0xc] sm:$0xf] %vm360_vm8, %v2398_v22  ;;  %v2392_v24 = vsel %vm4578_vm7, %v2390_v49, %v2391_v43  ;;  %v2393_v37 = vrot.slane %v2391_v43, 4  ;;  %v5381_v29 = vadd.f32 %v2279_v19, %v5043_v56  ;;  %v2282_v47 = vadd.f32 %v5336_v14, %v2281_v63  ;;  %4161 = vmatpush3.bf16.msra.mxu1 %v4368_v55 }
 0x4f2   :  { %2454 = vst.msk [vmem:[#allocation2 + $0x4] sm:$0xf] %vm360_vm8, %v2392_v24  ;;  %v3750_v50 = vpack.c.bf16 %v5373_v42, %v5373_v42  ;;  %v5388_v46 = vadd.f32 %v2290_v15, %v5050_v32  ;;  %4162 = vmatprep.subr.bf16.mxu1 %v4369_v5  ;;  %v2399_v32 = vrot.slane %v2397_v44, 4 }
 0x4f3   :  { %v2395_v41 = vsel %vm4578_vm7, %v2393_v37, %v2394_v21  ;;  %v3748_v56 = vpack.c.bf16 %v5381_v29, %v5381_v29  ;;  %v5397_v13 = vadd.f32 %v2282_v47, %v5059_v16 }
 0x4f4   :  { %2455 = vst.msk [vmem:[#allocation2 + $0x8] sm:$0xf] %vm360_vm8, %v2395_v41  ;;  %v2406_v26 = vrot.slane %v3750_v50, 6  ;;  %v3751_v45 = vpack.c.bf16 %v5388_v46, %v5388_v46  ;;  %v2344_v16 = vpack.c.bf16 %v5388_v46, %v5373_v42 }
 0x4f5   :  { %v2400_v52 = vrot.slane %v3748_v56, 6  ;;  %v2343_v33 = vpack.c.bf16 %v5397_v13, %v5381_v29  ;;  %v3749_v39 = vpack.c.bf16 %v5397_v13, %v5397_v13  ;;  %v4134_v55 = vpop.f32.mrb[24].mxu1  ;;  %4163 = vmatpush3.bf16.msra.mxu1 %v4369_v5 }
 0x4f6   :  { %v2408_v38 = vrot.slane %v2406_v26, 4  ;;  %v2409_v53 = vrot.slane %v3751_v45, 6  ;;  %v2303_v8 = vadd.f32 %v4134_v55, %v5336_v14  ;;  %v2294_v57 = vpop.f32.mrb[25].mxu1  ;;  %4180 = vmatprep.subr.bf16.mxu1 %v5390_v51 }
 0x4f7   :  { %v2401_v48 = vsel %vm4578_vm7, %v2399_v32, %v2400_v52  ;;  %v2402_v34 = vrot.slane %v2400_v52, 4  ;;  %v2403_v40 = vrot.slane %v3749_v39, 6  ;;  %v2295_v0 = vadd.f32 %v5336_v14, %v2294_v57  ;;  %v4135_v3 = vpop.f32.mrb[26].mxu1  ;;  %4148 = vmatprep.mubr.msk.bf16.mxu1 %vm709_vm6, %v2343_v33 }
 0x4f8   :  { %2457 = vst.msk [vmem:[#allocation2 + $0x10] sm:$0xf] %vm360_vm8, %v2401_v48  ;;  %v2410_v9 = vsel %vm4578_vm7, %v2408_v38, %v2409_v53  ;;  %v2411_v23 = vrot.slane %v2409_v53, 4  ;;  %v5418_v59 = vadd.f32 %v2303_v8, %v5080_v17  ;;  %v2306_v21 = vadd.f32 %v4135_v3, %v5336_v14  ;;  %v2297_v7 = vpop.f32.mrb[27].mxu1  ;;  %4149 = vmatmul.mubr.msk.bf16.gmra.mrb[36].mxu1 %vm709_vm6, %v2344_v16 }
 0x4f9   :  { %2460 = vst.msk [vmem:[#allocation2 + $0x1c] sm:$0xf] %vm360_vm8, %v2410_v9  ;;  %v2404_v1 = vsel %vm4578_vm7, %v2402_v34, %v2403_v40  ;;  %v2405_v10 = vrot.slane %v2403_v40, 4  ;;  %v5426_v12 = vadd.f32 %v2295_v0, %v5088_v35  ;;  %v2298_v25 = vadd.f32 %v5336_v14, %v2297_v7  ;;  %v2472_v53 = vld [vmem:[#allocation2 + $0x4] sm:$0xf] }
 0x4fa   :  { %2461 = vst.msk [vmem:[#allocation2 + $0x20] sm:$0x3] %vm48_vm3, %v2411_v23  ;;  %v3754_v17 = vpack.c.bf16 %v5418_v59, %v5418_v59  ;;  %v5434_v36 = vadd.f32 %v2306_v21, %v5098_v60  ;;  %v2471_v0 = vld [vmem:[#allocation2] sm:$0xf] }
 0x4fb   :  { %2458 = vst.msk [vmem:[#allocation2 + $0x14] sm:$0xf] %vm360_vm8, %v2404_v1  ;;  %v2407_v61 = vsel %vm4578_vm7, %v2405_v10, %v2406_v26  ;;  %v3752_v44 = vpack.c.bf16 %v5426_v12, %v5426_v12  ;;  %v5441_v35 = vadd.f32 %v2298_v25, %v5105_v11  ;;  %v3631_v21 = vcombine.low %v2471_v0, %v2472_v53 }
 0x4fc   :  { %2459 = vst.msk [vmem:[#allocation2 + $0x18] sm:$0xf] %vm360_vm8, %v2407_v61  ;;  %v2417_v18 = vrot.slane %v3754_v17, 6  ;;  %v3755_v28 = vpack.c.bf16 %v5434_v36, %v5434_v36  ;;  %v2346_v58 = vpack.c.bf16 %v5434_v36, %v5418_v59  ;;  %v2473_v61 = vld [vmem:[#allocation2 + $0x8] sm:$0xf] }
 0x4fd   :  { %v2412_v5 = vrot.slane %v3752_v44, 6  ;;  %v2345_v60 = vpack.c.bf16 %v5441_v35, %v5426_v12  ;;  %v3753_v49 = vpack.c.bf16 %v5441_v35, %v5441_v35  ;;  %v4138_v43 = vpop.f32.mrb[28].mxu1 }
 0x4fe   :  { %v2419_v19 = vrot.slane %v2417_v18, 4  ;;  %v2420_v11 = vrot.slane %v3755_v28, 6  ;;  %v2319_v22 = vadd.f32 %v4138_v43, %v5336_v14  ;;  %v2310_v15 = vpop.f32.mrb[29].mxu1 }
 0x4ff   :  { %v2413_v63 = vrot.slane %v2412_v5, 4  ;;  %2462 = vst.msk [vmem:[#allocation2 + $0x24] sm:$0xc] %vm51_vm2, %v2412_v5  ;;  %v2414_v24 = vrot.slane %v3753_v49, 6  ;;  %v2311_v37 = vadd.f32 %v5336_v14, %v2310_v15  ;;  %v4139_v47 = vpop.f32.mrb[30].mxu1  ;;  %4152 = vmatprep.mubr.msk.bf16.mxu1 %vm709_vm6, %v2345_v60  ;;  %v4377_v60 = vld [vmem:[#allocation3 + $0x88] sm:$0xff]  }
 0x500   :  { %v2421_v50 = vsel %vm4578_vm7, %v2419_v19, %v2420_v11  ;;  %v5459_v41 = vadd.f32 %v2319_v22, %v5128_v4  ;;  %v2322_v56 = vadd.f32 %v4139_v47, %v5336_v14  ;;  %v2313_v26 = vpop.f32.mrb[31].mxu1  ;;  %4153 = vmatmul.mubr.msk.bf16.gmra.mrb[40].mxu1 %vm709_vm6, %v2346_v58  ;;  %v2422_v8 = vrot.slane %v2420_v11, 4  ;;  %v2475_v5 = vld [vmem:[#allocation2 + $0x10] sm:$0xf]  ;;  %v2478_v30 = vld [vmem:[#allocation2 + $0x1c] sm:$0xf] }
 0x501   :  { %2465 = vst.msk [vmem:[#allocation2 + $0x30] sm:$0xf] %vm360_vm8, %v2421_v50  ;;  %v2415_v45 = vsel %vm4578_vm7, %v2413_v63, %v2414_v24  ;;  %v2416_v32 = vrot.slane %v2414_v24, 4  ;;  %v5467_v52 = vadd.f32 %v2311_v37, %v5143_v2  ;;  %v2314_v33 = vadd.f32 %v5336_v14, %v2313_v26 }
 0x502   :  { %2463 = vst.msk [vmem:[#allocation2 + $0x28] sm:$0xf] %vm360_vm8, %v2415_v45  ;;  %v3758_v4 = vpack.c.bf16 %v5459_v41, %v5459_v41  ;;  %v5474_v39 = vadd.f32 %v2322_v56, %v5150_v54  ;;  %v2476_v44 = vld [vmem:[#allocation2 + $0x14] sm:$0xf]  ;;  %v3649_v45 = vcombine.low %v2472_v53, %v2473_v61 }
 0x503   :  { %v2418_v55 = vsel %vm4578_vm7, %v2416_v32, %v2417_v18  ;;  %v3756_v38 = vpack.c.bf16 %v5467_v52, %v5467_v52  ;;  %v5481_v16 = vadd.f32 %v2314_v33, %v5158_v62  ;;  %v2474_v18 = vld [vmem:[#allocation2 + $0xc] sm:$0xf]  ;;  %v3633_v49 = vcombine.low %v2475_v5, %v2476_v44  ;;  %v2477_v43 = vld [vmem:[#allocation2 + $0x18] sm:$0xf] }
 0x504   :  { %2464 = vst.msk [vmem:[#allocation2 + $0x2c] sm:$0xf] %vm360_vm8, %v2418_v55  ;;  %v2429_v2 = vrot.slane %v3758_v4, 6  ;;  %v3759_v14 = vpack.c.bf16 %v5474_v39, %v5474_v39  ;;  %v2348_v62 = vpack.c.bf16 %v5474_v39, %v5459_v41  ;;  %v3632_v28 = vcombine.low %v2473_v61, %v2474_v18  ;;  %v2487_v4 = vld [vmem:[#allocation2 + $0x20] sm:$0xf] }
 0x505   :  { %v2423_v57 = vrot.slane %v3756_v38, 6  ;;  %v2347_v54 = vpack.c.bf16 %v5481_v16, %v5467_v52  ;;  %v3757_v48 = vpack.c.bf16 %v5481_v16, %v5481_v16  ;;  %v3634_v58 = vcombine.low %v2477_v43, %v2478_v30 }
 0x506   :  { %v2431_v34 = vrot.slane %v2429_v2, 4  ;;  %v2432_v40 = vrot.slane %v3759_v14, 6  ;;  %v2479_v11 = vld [vmem:[#allocation2 + $0x24] sm:$0xf]  ;;  %v3650_v32 = vcombine.low %v2474_v18, %v2475_v5  ;;  %v3651_v33 = vcombine.low %v2476_v44, %v2477_v43 }
 0x507   :  { %v2424_v3 = vsel %vm4578_vm7, %v2422_v8, %v2423_v57  ;;  %v2425_v9 = vrot.slane %v2423_v57, 4  ;;  %v2426_v23 = vrot.slane %v3757_v48, 6  ;;  %4156 = vmatprep.mubr.msk.bf16.mxu1 %vm709_vm6, %v2347_v54  ;;  %v3652_v55 = vcombine.low %v2478_v30, %v2487_v4  ;;  %v4390_v57 = vld [vmem:[%s5593_s7] sm:$0xff]  }
 0x508   :  { %2466 = vst.msk [vmem:[#allocation2 + $0x34] sm:$0xf] %vm360_vm8, %v2424_v3  ;;  %v2433_v7 = vsel %vm4578_vm7, %v2431_v34, %v2432_v40  ;;  %v2434_v1 = vrot.slane %v2432_v40, 4  ;;  %4157 = vmatmul.mubr.msk.bf16.gmra.mrb[44].mxu1 %vm709_vm6, %v2348_v62  ;;  %v2482_v24 = vld [vmem:[#allocation2 + $0x30] sm:$0xf]  ;;  %4220 = vmatprep.subr.bf16.mxu0 %v4390_v57 }
 0x509   :  { %2469 = vst.msk [vmem:[#allocation2 + $0x40] sm:$0xf] %vm360_vm8, %v2433_v7  ;;  %v2427_v10 = vsel %vm4578_vm7, %v2425_v9, %v2426_v23  ;;  %v2428_v25 = vrot.slane %v2426_v23, 4  ;;  %4164 = vmatprep.mubr.msk.bf16.mxu1 %vm709_vm6, %v3631_v21  ;;  %v2480_v19 = vld [vmem:[#allocation2 + $0x28] sm:$0xf] }
 0x50a   :  { %2470 = vst.msk [vmem:[#allocation2 + $0x44] sm:$0x3] %vm48_vm3, %v2434_v1  ;;  %v3635_v22 = vcombine.low %v2479_v11, %v2480_v19  ;;  %v3668_v54 = vld [vmem:[%s5590_s4 + $0x2] ss:$0 sm:$0xff] }
 0x50b   :  { %2467 = vst.msk [vmem:[#allocation2 + $0x38] sm:$0xf] %vm360_vm8, %v2427_v10  ;;  %v2430_v17 = vsel %vm4578_vm7, %v2428_v25, %v2429_v2  ;;  %v2481_v15 = vld [vmem:[#allocation2 + $0x2c] sm:$0xf] }
 0x50c   :  { %2468 = vst.msk [vmem:[#allocation2 + $0x3c] sm:$0xf] %vm360_vm8, %v2430_v17  ;;  %v3636_v37 = vcombine.low %v2481_v15, %v2482_v24  ;;  %v3653_v38 = vcombine.low %v2480_v19, %v2481_v15 }
 0x50f   :  { %v2483_v47 = vld [vmem:[#allocation2 + $0x34] sm:$0xf] }
 0x510   :  { %4165 = vmatmul.mubr.msk.bf16.vlgmr.msra.gmra.mrb[32].mxu1 %vm709_vm6, %v3632_v28  ;;  %v2486_v56 = vld [vmem:[#allocation2 + $0x40] sm:$0xf]  ;;  %v3654_v2 = vcombine.low %v2482_v24, %v2483_v47  ;;  %v4391_v28 = vld [vmem:[%s5593_s7 + $0x8] sm:$0xff]  }
 0x511   :  { %4181 = vmatpush3.bf16.msra.mxu1 %v5390_v51  ;;  %4168 = vmatprep.mubr.msk.bf16.mxu1 %vm709_vm6, %v3633_v49  ;;  %v2488_v53 = vld [vmem:[#allocation2 + $0x44] sm:$0xf] }
 0x512   :  { %4182 = vmatprep.subr.bf16.mxu1 %v4377_v60  ;;  %v2484_v63 = vld [vmem:[#allocation2 + $0x38] sm:$0xf]  ;;  %v3656_v8 = vcombine.low %v2486_v56, %v2488_v53 }
 0x513   :  { %v3637_v51 = vcombine.low %v2483_v47, %v2484_v63  ;;  %v2485_v50 = vld [vmem:[#allocation2 + $0x3c] sm:$0xf] }
 0x514   :  { %v3638_v26 = vcombine.low %v2485_v50, %v2486_v56  ;;  %v3655_v14 = vcombine.low %v2484_v63, %v2485_v50 }
 0x515   :  { %4183 = vmatpush3.bf16.msra.mxu1 %v4377_v60 }
 0x518   :  { %4169 = vmatmul.mubr.msk.bf16.gmra.mrb[36].mxu1 %vm709_vm6, %v3634_v58 }
 0x519   :  { %4172 = vmatprep.mubr.msk.bf16.mxu1 %vm709_vm6, %v3635_v22 }
 0x520   :  { %4173 = vmatmul.mubr.msk.bf16.gmra.mrb[40].mxu1 %vm709_vm6, %v3636_v37 }
 0x521   :  { %4176 = vmatprep.mubr.msk.bf16.mxu1 %vm709_vm6, %v3637_v51 }
 0x528   :  { %4177 = vmatmul.mubr.msk.bf16.gmra.mrb[44].mxu1 %vm709_vm6, %v3638_v26 }
 0x529   :  { %4184 = vmatprep.mubr.msk.bf16.mxu1 %vm709_vm6, %v3649_v45 }
 0x530   :  { %4185 = vmatmul.mubr.msk.bf16.vlgmr.msra.gmra.mrb[32].mxu1 %vm709_vm6, %v3650_v32 }
 0x531   :  { %4188 = vmatprep.mubr.msk.bf16.mxu1 %vm709_vm6, %v3651_v33 }
 0x538   :  { %4189 = vmatmul.mubr.msk.bf16.gmra.mrb[36].mxu1 %vm709_vm6, %v3652_v55 }
 0x539   :  { %4192 = vmatprep.mubr.msk.bf16.mxu1 %vm709_vm6, %v3653_v38 }
 0x540   :  { %4193 = vmatmul.mubr.msk.bf16.gmra.mrb[40].mxu1 %vm709_vm6, %v3654_v2 }
 0x541   :  { %4196 = vmatprep.mubr.msk.bf16.mxu1 %vm709_vm6, %v3655_v14 }
 0x548   :  { %4197 = vmatmul.mubr.msk.bf16.gmra.mrb[44].mxu1 %vm709_vm6, %v3656_v8 }
 0x603   :  { %v4186_v48 = vpop.f32.mrb[32].mxu1 }
 0x604   :  { %v2981_v34 = vadd.f32 %v4186_v48, %v3668_v54  ;;  %v2892_v62 = vpop.f32.mrb[33].mxu1 }
 0x605   :  { %v2979_v40 = vadd.f32 %v3668_v54, %v2892_v62  ;;  %v4187_v0 = vpop.f32.mrb[34].mxu1 }
 0x606   :  { %v2982_v3 = vadd.f32 %v4187_v0, %v3668_v54  ;;  %v2895_v9 = vpop.f32.mrb[35].mxu1  ;;  %v2997_v21 = vmax.f32 %v2981_v34, 0.0 }
 0x607   :  { %v2980_v23 = vadd.f32 %v3668_v54, %v2895_v9  ;;  %v2995_v1 = vmax.f32 %v2979_v40, 0.0 }
 0x608   :  { %v2998_v7 = vmax.f32 %v2982_v3, 0.0 }
 0x609   :  { %v2996_v10 = vmax.f32 %v2980_v23, 0.0 }
 0x60a   :  { %v3012_v25 = vpack.c.bf16 %v2998_v7, %v2997_v21 }
 0x60b   :  { %v3011_v17 = vpack.c.bf16 %v2996_v10, %v2995_v1  ;;  %v4190_v61 = vpop.f32.mrb[36].mxu1  ;;  %v3674_v1 = vld [vmem:[%s5592_s6 + $0x2] ss:$0 sm:$0xff] }
 0x60c   :  { %v2985_v44 = vadd.f32 %v4190_v61, %v3668_v54  ;;  %v2908_v18 = vpop.f32.mrb[37].mxu1 }
 0x60d   :  { %v2983_v5 = vadd.f32 %v3668_v54, %v2908_v18  ;;  %v4191_v60 = vpop.f32.mrb[38].mxu1  ;;  %4204 = vmatprep.mubr.msk.bf16.mxu0 %vm709_vm6, %v3011_v17 }
 0x60e   :  { %v2986_v49 = vadd.f32 %v4191_v60, %v3668_v54  ;;  %v2911_v43 = vpop.f32.mrb[39].mxu1  ;;  %4205 = vmatmul.mubr.msk.bf16.vlgmr.msra.gmra.mrb[48].mxu0 %vm709_vm6, %v3012_v25  ;;  %v3001_v30 = vmax.f32 %v2985_v44, 0.0 }
 0x60f   :  { %v2984_v19 = vadd.f32 %v3668_v54, %v2911_v43  ;;  %4221 = vmatpush3.bf16.msra.mxu0 %v4390_v57  ;;  %v2999_v11 = vmax.f32 %v2983_v5, 0.0 }
 0x610   :  { %v3002_v58 = vmax.f32 %v2986_v49, 0.0  ;;  %4222 = vmatprep.subr.bf16.mxu0 %v4391_v28 }
 0x611   :  { %v3000_v22 = vmax.f32 %v2984_v19, 0.0 }
 0x612   :  { %v3014_v15 = vpack.c.bf16 %v3002_v58, %v3001_v30 }
 0x613   :  { %v3013_v63 = vpack.c.bf16 %v3000_v22, %v2999_v11  ;;  %v4194_v24 = vpop.f32.mrb[40].mxu1  ;;  %4223 = vmatpush3.bf16.msra.mxu0 %v4391_v28 }
 0x614   :  { %v2989_v37 = vadd.f32 %v4194_v24, %v3668_v54  ;;  %v2924_v47 = vpop.f32.mrb[41].mxu1 }
 0x615   :  { %v2987_v51 = vadd.f32 %v3668_v54, %v2924_v47  ;;  %v4195_v50 = vpop.f32.mrb[42].mxu1  ;;  %4208 = vmatprep.mubr.msk.bf16.mxu0 %vm709_vm6, %v3013_v63 }
 0x616   :  { %v2990_v56 = vadd.f32 %v4195_v50, %v3668_v54  ;;  %v2927_v26 = vpop.f32.mrb[43].mxu1  ;;  %4209 = vmatmul.mubr.msk.bf16.gmra.mrb[52].mxu0 %vm709_vm6, %v3014_v15  ;;  %v3005_v32 = vmax.f32 %v2989_v37, 0.0 }
 0x617   :  { %v2988_v45 = vadd.f32 %v3668_v54, %v2927_v26  ;;  %v3003_v4 = vmax.f32 %v2987_v51, 0.0 }
 0x618   :  { %v3006_v33 = vmax.f32 %v2990_v56, 0.0 }
 0x619   :  { %v3004_v55 = vmax.f32 %v2988_v45, 0.0 }
 0x61a   :  { %v3016_v38 = vpack.c.bf16 %v3006_v33, %v3005_v32 }
 0x61b   :  { %v3015_v2 = vpack.c.bf16 %v3004_v55, %v3003_v4  ;;  %v4198_v14 = vpop.f32.mrb[44].mxu1 }
 0x61c   :  { %v2993_v53 = vadd.f32 %v4198_v14, %v3668_v54  ;;  %v2940_v8 = vpop.f32.mrb[45].mxu1 }
 0x61d   :  { %v2991_v57 = vadd.f32 %v3668_v54, %v2940_v8  ;;  %v4199_v48 = vpop.f32.mrb[46].mxu1  ;;  %4212 = vmatprep.mubr.msk.bf16.mxu0 %vm709_vm6, %v3015_v2 }
 0x61e   :  { %v2994_v34 = vadd.f32 %v4199_v48, %v3668_v54  ;;  %v2943_v62 = vpop.f32.mrb[47].mxu1  ;;  %4213 = vmatmul.mubr.msk.bf16.gmra.mrb[56].mxu0 %vm709_vm6, %v3016_v38  ;;  %v3009_v0 = vmax.f32 %v2993_v53, 0.0 }
 0x61f   :  { %v2992_v40 = vadd.f32 %v3668_v54, %v2943_v62  ;;  %v3007_v9 = vmax.f32 %v2991_v57, 0.0 }
 0x620   :  { %v3010_v3 = vmax.f32 %v2994_v34, 0.0 }
 0x621   :  { %v3008_v23 = vmax.f32 %v2992_v40, 0.0 }
 0x622   :  { %v3018_v21 = vpack.c.bf16 %v3010_v3, %v3009_v0 }
 0x623   :  { %v3017_v7 = vpack.c.bf16 %v3008_v23, %v3007_v9 }
 0x625   :  { %4216 = vmatprep.mubr.msk.bf16.mxu0 %vm709_vm6, %v3017_v7 }
 0x626   :  { %4217 = vmatmul.mubr.msk.bf16.gmra.mrb[60].mxu0 %vm709_vm6, %v3018_v21  ;;  %v3685_v21 = vld [vmem:[%s5594_s8] ss:$0 sm:$0xff]  ;;  %s4444_s8 = smov [#allocation6]  }
 0x627   :  { %s3418_s24 = sshll.u32 %s4444_s8, 4  ;;  %s3419_s24 = int_to_ptr.vmem [resolvable:$true] %s3418_s24 }
 0x628   :  { %s4414_s2 = scalar_lea.vmem %s3419_s24, 1024  ;;  %p4419_p9 = scmp.lt.s32.totalorder %s3419_s24, %s3419_s24 }
 0x629   :  { %p4415_p8 = scmp.ne.s32.totalorder %s3419_s24, %s4414_s2  ;;  %p4420_p10 = scmp.lt.s32.totalorder %s4414_s2, %s4414_s2 }
 0x62b   :  { %p4421_p11 = por %p4420_p10, %p4419_p9 }
 0x62d   :  { %p4422_p12 = pnand %p4421_p11, %p4415_p8 }
 0x6e1   :  { %v4206_v10 = vpop.f32.mrb[48].mxu0 }
 0x6e2   :  { %v3111_v25 = vadd.f32 %v4206_v10, %v3674_v1  ;;  %v3102_v17 = vpop.f32.mrb[49].mxu0 }
 0x6e3   :  { %v3103_v61 = vadd.f32 %v3674_v1, %v3102_v17  ;;  %v4207_v44 = vpop.f32.mrb[50].mxu0 }
 0x6e4   :  { %v3114_v54 = vadd.f32 %v4207_v44, %v3674_v1  ;;  %v3105_v18 = vpop.f32.mrb[51].mxu0  ;;  %v3167_v5 = vadd.f32 %v3111_v25, %v5341_v31 }
 0x6e5   :  { %v3106_v28 = vadd.f32 %v3674_v1, %v3105_v18  ;;  %v3165_v49 = vadd.f32 %v3103_v61, %v5345_v6 }
 0x6e6   :  { %v3168_v60 = vadd.f32 %v3114_v54, %v5351_v20 }
 0x6e7   :  { %v3166_v43 = vadd.f32 %v3106_v28, %v5356_v27 }
 0x6e8   :  { %v3182_v19 = vpack.c.bf16 %v3168_v60, %v3167_v5 }
 0x6e9   :  { %v3181_v30 = vpack.c.bf16 %v3166_v43, %v3165_v49  ;;  %v4210_v58 = vpop.f32.mrb[52].mxu0 }
 0x6ea   :  { %v3127_v11 = vadd.f32 %v4210_v58, %v3674_v1  ;;  %v3118_v22 = vpop.f32.mrb[53].mxu0 }
 0x6eb   :  { %v3119_v15 = vadd.f32 %v3674_v1, %v3118_v22  ;;  %v4211_v63 = vpop.f32.mrb[54].mxu0  ;;  %4224 = vmatprep.mubr.msk.bf16.mxu0 %vm709_vm6, %v3181_v30 }
 0x6ec   :  { %v3130_v24 = vadd.f32 %v4211_v63, %v3674_v1  ;;  %v3121_v37 = vpop.f32.mrb[55].mxu0  ;;  %4225 = vmatmul.mubr.msk.bf16.vlgmr.msra.gmra.mrb[64].mxu0 %vm709_vm6, %v3182_v19  ;;  %v3171_v20 = vadd.f32 %v3127_v11, %v5373_v42 }
 0x6ed   :  { %v3122_v31 = vadd.f32 %v3674_v1, %v3121_v37  ;;  %v3169_v27 = vadd.f32 %v3119_v15, %v5381_v29 }
 0x6ee   :  { %v3172_v6 = vadd.f32 %v3130_v24, %v5388_v46 }
 0x6ef   :  { %v3170_v47 = vadd.f32 %v3122_v31, %v5397_v13 }
 0x6f0   :  { %v3184_v51 = vpack.c.bf16 %v3172_v6, %v3171_v20 }
 0x6f1   :  { %v3183_v50 = vpack.c.bf16 %v3170_v47, %v3169_v27  ;;  %v4214_v56 = vpop.f32.mrb[56].mxu0 }
 0x6f2   :  { %v3143_v26 = vadd.f32 %v4214_v56, %v3674_v1  ;;  %v3134_v45 = vpop.f32.mrb[57].mxu0 }
 0x6f3   :  { %v3135_v32 = vadd.f32 %v3674_v1, %v3134_v45  ;;  %v4215_v33 = vpop.f32.mrb[58].mxu0  ;;  %4228 = vmatprep.mubr.msk.bf16.mxu0 %vm709_vm6, %v3183_v50 }
 0x6f4   :  { %v3146_v4 = vadd.f32 %v4215_v33, %v3674_v1  ;;  %v3137_v55 = vpop.f32.mrb[59].mxu0  ;;  %4229 = vmatmul.mubr.msk.bf16.gmra.mrb[68].mxu0 %vm709_vm6, %v3184_v51  ;;  %v3175_v46 = vadd.f32 %v3143_v26, %v5418_v59 }
 0x6f5   :  { %v3138_v42 = vadd.f32 %v3674_v1, %v3137_v55  ;;  %v3173_v13 = vadd.f32 %v3135_v32, %v5426_v12 }
 0x6f6   :  { %v3176_v29 = vadd.f32 %v3146_v4, %v5434_v36 }
 0x6f7   :  { %v3174_v38 = vadd.f32 %v3138_v42, %v5441_v35 }
 0x6f8   :  { %v3186_v2 = vpack.c.bf16 %v3176_v29, %v3175_v46 }
 0x6f9   :  { %v3185_v14 = vpack.c.bf16 %v3174_v38, %v3173_v13  ;;  %v4218_v53 = vpop.f32.mrb[60].mxu0 }
 0x6fa   :  { %v3159_v8 = vadd.f32 %v4218_v53, %v3674_v1  ;;  %v3150_v57 = vpop.f32.mrb[61].mxu0 }
 0x6fb   :  { %v3151_v48 = vadd.f32 %v3674_v1, %v3150_v57  ;;  %v4219_v34 = vpop.f32.mrb[62].mxu0  ;;  %4232 = vmatprep.mubr.msk.bf16.mxu0 %vm709_vm6, %v3185_v14 }
 0x6fc   :  { %v3162_v62 = vadd.f32 %v4219_v34, %v3674_v1  ;;  %v3153_v40 = vpop.f32.mrb[63].mxu0  ;;  %4233 = vmatmul.mubr.msk.bf16.gmra.mrb[72].mxu0 %vm709_vm6, %v3186_v2  ;;  %v3179_v36 = vadd.f32 %v3159_v8, %v5459_v41 }
 0x6fd   :  { %v3154_v59 = vadd.f32 %v3674_v1, %v3153_v40  ;;  %v3177_v35 = vadd.f32 %v3151_v48, %v5467_v52 }
 0x6fe   :  { %v3180_v12 = vadd.f32 %v3162_v62, %v5474_v39 }
 0x6ff   :  { %v3178_v0 = vadd.f32 %v3154_v59, %v5481_v16 }
 0x700   :  { %v3188_v3 = vpack.c.bf16 %v3180_v12, %v3179_v36 }
 0x701   :  { %v3187_v9 = vpack.c.bf16 %v3178_v0, %v3177_v35 }
 0x703   :  { %4236 = vmatprep.mubr.msk.bf16.mxu0 %vm709_vm6, %v3187_v9 }
 0x704   :  { %4237 = vmatmul.mubr.msk.bf16.gmra.mrb[76].mxu0 %vm709_vm6, %v3188_v3 }
 0x7bf   :  { %v4226_v23 = vpop.f32.mrb[64].mxu0 }
 0x7c0   :  { %v3270_v7 = vpop.f32.mrb[65].mxu0  ;;  %v3279_v41 = vadd.f32 %v4226_v23, %v3685_v21 }
 0x7c1   :  { %v4227_v1 = vpop.f32.mrb[66].mxu0  ;;  %v3271_v25 = vadd.f32 %v3685_v21, %v3270_v7 }
 0x7c2   :  { %v3282_v10 = vadd.f32 %v4227_v1, %v3685_v21  ;;  %v3273_v39 = vpop.f32.mrb[67].mxu0 }
 0x7c3   :  { %v3274_v52 = vadd.f32 %v3685_v21, %v3273_v39 }
 0x7c4   :  { %v3784_v17 = vpack.c.bf16 %v3282_v10, %v3279_v41 }
 0x7c5   :  { %v3779_v16 = vpack.c.bf16 %v3274_v52, %v3271_v25 }
 0x7c6   :  { %3816 = vst [vmem:[#allocation6 + $0x8] sm:$0xff] %v3784_v17  }
 0x7c7   :  { %3780 = vst [vmem:[#allocation6] sm:$0xff] %v3779_v16   ;;  %v4230_v61 = vpop.f32.mrb[68].mxu0 }
 0x7c8   :  { %v3286_v44 = vpop.f32.mrb[69].mxu0  ;;  %v3295_v18 = vadd.f32 %v4230_v61, %v3685_v21 }
 0x7c9   :  { %v4231_v54 = vpop.f32.mrb[70].mxu0  ;;  %v3287_v60 = vadd.f32 %v3685_v21, %v3286_v44 }
 0x7ca   :  { %v3298_v28 = vadd.f32 %v4231_v54, %v3685_v21  ;;  %v3289_v5 = vpop.f32.mrb[71].mxu0 }
 0x7cb   :  { %v3290_v49 = vadd.f32 %v3685_v21, %v3289_v5 }
 0x7cc   :  { %v3794_v43 = vpack.c.bf16 %v3298_v28, %v3295_v18 }
 0x7cd   :  { %v3789_v19 = vpack.c.bf16 %v3290_v49, %v3287_v60 }
 0x7ce   :  { %3818 = vst [vmem:[#allocation6 + $0x18] sm:$0xff] %v3794_v43  }
 0x7cf   :  { %3817 = vst [vmem:[#allocation6 + $0x10] sm:$0xff] %v3789_v19   ;;  %v4234_v30 = vpop.f32.mrb[72].mxu0 }
 0x7d0   :  { %v3302_v58 = vpop.f32.mrb[73].mxu0  ;;  %v3311_v22 = vadd.f32 %v4234_v30, %v3685_v21 }
 0x7d1   :  { %v4235_v11 = vpop.f32.mrb[74].mxu0  ;;  %v3303_v24 = vadd.f32 %v3685_v21, %v3302_v58 }
 0x7d2   :  { %v3314_v15 = vadd.f32 %v4235_v11, %v3685_v21  ;;  %v3305_v63 = vpop.f32.mrb[75].mxu0 }
 0x7d3   :  { %v3306_v37 = vadd.f32 %v3685_v21, %v3305_v63 }
 0x7d4   :  { %v3804_v31 = vpack.c.bf16 %v3314_v15, %v3311_v22 }
 0x7d5   :  { %v3799_v20 = vpack.c.bf16 %v3306_v37, %v3303_v24 }
 0x7d6   :  { %3820 = vst [vmem:[#allocation6 + $0x28] sm:$0xff] %v3804_v31  }
 0x7d7   :  { %3819 = vst [vmem:[#allocation6 + $0x20] sm:$0xff] %v3799_v20   ;;  %v4238_v6 = vpop.f32.mrb[76].mxu0 }
 0x7d8   :  { %v3318_v27 = vpop.f32.mrb[77].mxu0  ;;  %v3327_v51 = vadd.f32 %v4238_v6, %v3685_v21 }
 0x7d9   :  { %v4239_v47 = vpop.f32.mrb[78].mxu0  ;;  %v3319_v26 = vadd.f32 %v3685_v21, %v3318_v27 }
 0x7da   :  { %v3330_v50 = vadd.f32 %v4239_v47, %v3685_v21  ;;  %v3321_v56 = vpop.f32.mrb[79].mxu0 }
 0x7db   :  { %v3322_v45 = vadd.f32 %v3685_v21, %v3321_v56 }
 0x7dc   :  { %v3814_v32 = vpack.c.bf16 %v3330_v50, %v3327_v51 }
 0x7dd   :  { %v3809_v33 = vpack.c.bf16 %v3322_v45, %v3319_v26 }
 0x7de   :  { %3822 = vst [vmem:[#allocation6 + $0x38] sm:$0xff] %v3814_v32  }
 0x7df   :  { %3821 = vst [vmem:[#allocation6 + $0x30] sm:$0xff] %v3809_v33  }
 0x7e0   :  { %4425 = shalt.err (!%p4422_p12)
}
 0x7e1   :  { %s4426_s27 = scalar_lea.hbm %s5595_s9, 1024 }
 0x7e2   :  { %p4427_p13 = scmp.ne.s32.totalorder %s5595_s9, %s4426_s27  ;;  %p4430_p0 = scmp.lt.u32.totalorder %s4426_s27, %s5595_s9 }
 0x7e4   :  { %p4432_p1 = pnand %p4430_p0, %p4427_p13 }
 0x7e6   :  { %4435 = shalt.err (!%p4432_p1)
}
 0x7e7   :  { %3424 = dma.vmem_to_hbm [thread:$0]  %s3419_s24, 1024, %s5595_s9, [#allocation5], %s4441_s19, %s4441_s19, %s4442_s20  }
 0x7e8   :  { %4438 = dma.done.wait [#allocation5], 1024  }
 0x7e9   :  { %4439 = vsyncadd [#allocation5], 4294966272 }
 0x7ea   :  { %3428 = vsyncpa [#allocation4], 1 }
 0x7eb   :  { %3429 = vsyncpa [#allocation5], 1 }

</bundles_post_ra>
